<compile_context>
chip_gen: v5e
topology: v5e:2x2
jax: 0.10.0
libtpu: 0.0.40
codegen_flags: <defaults>
</compile_context>

<pallas_src>
import math

import jax
import jax.numpy as jnp
from jax.experimental import pallas as pl
from jax.experimental.pallas import tpu as pltpu


# --------------------------------------------------------------------------
# Pallas kernel: TILE_S Monte-Carlo samples of the gating MLP per grid step.
# --------------------------------------------------------------------------
def _gating_kernel(x_ref, w1_ref, wmid_ref, w3_ref, b_ref, probs_ref):
    ts = w1_ref.shape[0]            # samples per grid step
    b_sz = x_ref.shape[0]           # batch
    d_in = x_ref.shape[1]
    h_dim = w1_ref.shape[2]
    e_dim = w3_ref.shape[2]

    x = x_ref[...]                                            # (B, D_in) f32
    biases = b_ref[...]                                       # (TS, 6, P)

    # Layer 1: shared x broadcast over the sample axis, batched contraction.
    xb = jnp.broadcast_to(x[None], (ts, b_sz, d_in))          # (TS, B, D_in)
    h = jnp.einsum('sbd,sdo->sbo', xb, w1_ref[...],
                   preferred_element_type=jnp.float32)
    h = jnp.maximum(h + biases[:, 0, :h_dim][:, None, :], 0.0)

    # Layers 2, 2a, 2b, 2c (packed): per-sample (H,H) batched matmuls.
    wmid = wmid_ref[...]                                      # (TS, 4, H, H)
    for i in range(4):
        h = jnp.einsum('sbd,sdo->sbo', h, wmid[:, i],
                       preferred_element_type=jnp.float32)
        h = jnp.maximum(h + biases[:, 1 + i, :h_dim][:, None, :], 0.0)

    # Layer 3 -> logits, then softmax over the expert axis.
    logits = jnp.einsum('sbd,sde->sbe', h, w3_ref[...],
                        preferred_element_type=jnp.float32)
    logits = logits + biases[:, 5, :e_dim][:, None, :]

    m = jnp.max(logits, axis=-1, keepdims=True)
    e = jnp.exp(logits - m)
    probs_ref[...] = e / jnp.sum(e, axis=-1, keepdims=True)   # (TS, B, E)


def gating_mlp(x, w1, w_mid, w3, b_all, *, tile_s=16):
    """Run the gating MLP for every sampled weight set in one pallas_call.

    x:      (B, D_in) float32
    w1:     (S_pad, D_in, H)
    w_mid:  (S_pad, 4, H, H)
    w3:     (S_pad, H, E)
    b_all:  (S_pad, 6, max(H, E))
    returns probs (S_pad, B, E)
    """
    s_pad = w1.shape[0]
    assert s_pad % tile_s == 0
    batch, d_in = x.shape
    h_dim = w1.shape[2]
    e_dim = w3.shape[2]
    p_dim = b_all.shape[2]

    grid = (s_pad // tile_s,)
    probs = pl.pallas_call(
        _gating_kernel,
        grid=grid,
        in_specs=[
            pl.BlockSpec((batch, d_in), lambda s: (0, 0)),
            pl.BlockSpec((tile_s, d_in, h_dim), lambda s: (s, 0, 0)),
            pl.BlockSpec((tile_s, 4, h_dim, h_dim), lambda s: (s, 0, 0, 0)),
            pl.BlockSpec((tile_s, h_dim, e_dim), lambda s: (s, 0, 0)),
            pl.BlockSpec((tile_s, 6, p_dim), lambda s: (s, 0, 0)),
        ],
        out_specs=pl.BlockSpec((tile_s, batch, e_dim), lambda s: (s, 0, 0)),
        out_shape=jax.ShapeDtypeStruct((s_pad, batch, e_dim), jnp.float32),
        compiler_params=pltpu.CompilerParams(
            dimension_semantics=("parallel",)),
    )(x, w1, w_mid, w3, b_all)
    return probs


# --------------------------------------------------------------------------
# Parameter init + Bayesian reparameterization sampling (plain-JAX glue).
# --------------------------------------------------------------------------
def init_params(key, input_dim, hidden_dim, num_experts):
    dims = ([(input_dim, hidden_dim)]
            + [(hidden_dim, hidden_dim)] * 4
            + [(hidden_dim, num_experts)])
    params = []
    for i, (din, dout) in enumerate(dims):
        k = jax.random.fold_in(key, i)
        kw, kr, kb, kbr = jax.random.split(k, 4)
        params.append(dict(
            weight_mu=0.1 * jax.random.normal(kw, (dout, din), jnp.float32),
            weight_rho=-3.0 + 0.1 * jax.random.normal(kr, (dout, din), jnp.float32),
            bias_mu=0.1 * jax.random.normal(kb, (dout,), jnp.float32),
            bias_rho=-3.0 + 0.1 * jax.random.normal(kbr, (dout,), jnp.float32),
        ))
    return params


def _softplus(x):
    return jnp.logaddexp(x, 0.0)


def sample_and_pack(params, key, num_samples_total, pad_to):
    """Sample `num_samples_total` weight sets (w = mu + eps*softplus(rho)) and
    pack them into the 4 kernel arrays (padded along the sample axis to `pad_to`).

    Returns (w1, w_mid, w3, b_all), raw0
      raw0: list of (w0, b0) per layer for the FIRST sample (used for the KL term).
    """
    s = num_samples_total
    ws_t, bs, raw0 = [], [], []
    for i, layer in enumerate(params):
        k = jax.random.fold_in(key, i)
        kw, kb = jax.random.split(k)
        w_sigma = _softplus(layer['weight_rho'])                  # (out, in)
        b_sigma = _softplus(layer['bias_rho'])                    # (out,)
        eps_w = jax.random.normal(kw, (s,) + layer['weight_mu'].shape, jnp.float32)
        eps_b = jax.random.normal(kb, (s,) + layer['bias_mu'].shape, jnp.float32)
        w = layer['weight_mu'][None] + eps_w * w_sigma[None]      # (S, out, in)
        b = layer['bias_mu'][None] + eps_b * b_sigma[None]        # (S, out)
        raw0.append((w[0], b[0]))
        ws_t.append(jnp.transpose(w, (0, 2, 1)))                  # (S, in, out)
        bs.append(b)

    def pad_s(a):
        return jnp.pad(a, ((0, pad_to - s),) + ((0, 0),) * (a.ndim - 1))

    w1 = pad_s(ws_t[0])                                           # (S_pad, D, H)
    w_mid = pad_s(jnp.stack(ws_t[1:5], axis=1))                   # (S_pad, 4, H, H)
    w3 = pad_s(ws_t[5])                                           # (S_pad, H, E)

    p_dim = max(b_.shape[-1] for b_ in bs)
    b_padded = [jnp.pad(b_, ((0, 0), (0, p_dim - b_.shape[-1]))) for b_ in bs]
    b_all = pad_s(jnp.stack(b_padded, axis=1))                    # (S_pad, 6, P)

    return (w1, w_mid, w3, b_all), raw0


def _log_gaussian(x, mu, sigma):
    return -0.5 * jnp.log(2.0 * math.pi * sigma ** 2) - (x - mu) ** 2 / (2.0 * sigma ** 2)


def _log_gaussian_mixture(x, sigma1, sigma2, pi):
    return jnp.log(pi * jnp.exp(_log_gaussian(x, 0.0, sigma1))
                   + (1.0 - pi) * jnp.exp(_log_gaussian(x, 0.0, sigma2)))


def compute_kl(params, raw0, prior_sigma1=1.0, prior_sigma2=0.0025, prior_pi=0.5):
    """KL side output of the Bayesian layers (sum of log_posterior - log_prior)
    for the first sampled weight set (the `sample=True` forward pass)."""
    kl = jnp.float32(0.0)
    for layer, (w0, b0) in zip(params, raw0):
        w_sigma = _softplus(layer['weight_rho'])
        b_sigma = _softplus(layer['bias_rho'])
        log_post = (_log_gaussian(w0, layer['weight_mu'], w_sigma).sum()
                    + _log_gaussian(b0, layer['bias_mu'], b_sigma).sum())
        log_prior = (_log_gaussian_mixture(w0, prior_sigma1, prior_sigma2, prior_pi).sum()
                     + _log_gaussian_mixture(b0, prior_sigma1, prior_sigma2, prior_pi).sum())
        kl = kl + (log_post - log_prior)
    return kl


# --------------------------------------------------------------------------
# MixtureOfExperts.forward
# --------------------------------------------------------------------------
def mixture_of_experts_forward(params, text_embedding, key, num_samples=75, tile_s=16):
    # One fused launch covering:
    #   sample 0            -> the `sample=True` forward pass (expert_probs, KL)
    #   samples 1 .. N      -> MC run for the uncertainty estimate
    #   samples N+1 .. 2N   -> MC run for predict_expert's mean_probs
    s_total = 1 + 2 * num_samples
    s_pad = ((s_total + tile_s - 1) // tile_s) * tile_s
    packed, raw0 = sample_and_pack(params, key, s_total, s_pad)

    probs_all = gating_mlp(text_embedding, *packed, tile_s=tile_s)   # (S_pad, B, E)

    expert_probs = probs_all[0]                                      # (B, E)
    probs_mc1 = probs_all[1:1 + num_samples]
    probs_mc2 = probs_all[1 + num_samples:1 + 2 * num_samples]

    # TODO(synk): the reference uses Hamiltonian Monte Carlo over the *input*
    # (autograd leapfrog + Metropolis acceptance) for the uncertainty estimate;
    # here it is replaced by plain Monte Carlo over the Bayesian weight posterior.
    uncertainty = jnp.std(probs_mc1, axis=0, ddof=1)                 # torch.std is unbiased
    mean_probs = jnp.mean(probs_mc2, axis=0)                         # (B, E)

    kl = compute_kl(params, raw0)                                    # side output
    return expert_probs, mean_probs, uncertainty, kl


def select_experts(mean_probs_host, num_experts, threshold=0.7):
    # mirrors predict_expert's thresholding (single-example semantics: row 0)
    selected = [i for i in range(num_experts) if mean_probs_host[0, i] > threshold]
    if not selected:
        selected = [int(mean_probs_host[0].argmax())]
    return selected


if __name__ == "__main__":
    input_dim, hidden_dim, num_experts = 32, 32, 8
    batch = 2
    num_samples = 75   # BayesianMoEGatingNetwork default

    root = jax.random.PRNGKey(0)
    k_param, k_x, k_fwd = jax.random.split(root, 3)

    params = init_params(k_param, input_dim, hidden_dim, num_experts)
    text_embedding = jax.random.normal(k_x, (batch, input_dim), jnp.float32)

    fwd = jax.jit(mixture_of_experts_forward,
                  static_argnames=('num_samples', 'tile_s'))
    expert_probs, mean_probs, uncertainty, kl = fwd(
        params, text_embedding, k_fwd, num_samples=num_samples, tile_s=16)

    expert_probs = jax.block_until_ready(expert_probs)
    mean_probs = jax.block_until_ready(mean_probs)
    uncertainty = jax.block_until_ready(uncertainty)
    kl = jax.block_until_ready(kl)

    selected_experts = select_experts(jax.device_get(mean_probs), num_experts)

    assert expert_probs.shape == (batch, num_experts)
    assert mean_probs.shape == (batch, num_experts)
    assert uncertainty.shape == (batch, num_experts)
    assert len(selected_experts) >= 1
    assert bool(jnp.all(jnp.isfinite(expert_probs)))
    assert bool(jnp.all(jnp.isfinite(uncertainty)))
    assert bool(jnp.allclose(expert_probs.sum(axis=-1), 1.0, atol=1e-5))
    assert bool(jnp.allclose(mean_probs.sum(axis=-1), 1.0, atol=1e-5))

    print("KERNEL_OK")
</pallas_src>

<mosaic_0001>
module attributes {stable_mosaic.version = 11 : i64} {
  func.func @_gating_kernel(%arg0: i32, %arg1: memref<2x32xf32, #tpu.memory_space<vmem>>, %arg2: memref<16x32x32xf32, #tpu.memory_space<vmem>>, %arg3: memref<16x4x32x32xf32, #tpu.memory_space<vmem>>, %arg4: memref<16x32x8xf32, #tpu.memory_space<vmem>>, %arg5: memref<16x6x32xf32, #tpu.memory_space<vmem>>, %arg6: memref<16x2x8xf32, #tpu.memory_space<vmem>>) attributes {dimension_semantics = [#tpu.dimension_semantics<parallel>], iteration_bounds = array<i64: 10>, scalar_prefetch = 0 : i64, scratch_operands = 0 : i64, tpu.core_type = #tpu.core_type<tc>, window_params = [{pipeline_mode = #tpu.pipeline_mode<synchronous>, transform_indices = @transform_0, window_bounds = array<i64: 2, 32>}, {transform_indices = @transform_1, window_bounds = array<i64: 16, 32, 32>}, {transform_indices = @transform_2, window_bounds = array<i64: 16, 4, 32, 32>}, {transform_indices = @transform_3, window_bounds = array<i64: 16, 32, 8>}, {transform_indices = @transform_4, window_bounds = array<i64: 16, 6, 32>}, {transform_indices = @transform_5, window_bounds = array<i64: 16, 2, 8>}]} {
    %c0 = arith.constant 0 : index
    %c0_0 = arith.constant 0 : index
    %0 = vector.load %arg1[%c0, %c0_0] : memref<2x32xf32, #tpu.memory_space<vmem>>, vector<2x32xf32>
    %c0_1 = arith.constant 0 : index
    %c0_2 = arith.constant 0 : index
    %c0_3 = arith.constant 0 : index
    %1 = vector.load %arg5[%c0_1, %c0_2, %c0_3] : memref<16x6x32xf32, #tpu.memory_space<vmem>>, vector<16x6x32xf32>
    %2 = vector.shape_cast %0 : vector<2x32xf32> to vector<1x2x32xf32>
    %3 = vector.shape_cast %2 : vector<1x2x32xf32> to vector<1x2x32xf32>
    %4 = vector.broadcast %3 : vector<1x2x32xf32> to vector<16x2x32xf32>
    %c0_4 = arith.constant 0 : index
    %c0_5 = arith.constant 0 : index
    %c0_6 = arith.constant 0 : index
    %5 = vector.load %arg2[%c0_4, %c0_5, %c0_6] : memref<16x32x32xf32, #tpu.memory_space<vmem>>, vector<16x32x32xf32>
    "tpu.trace_start"() <{level = 10 : i32, message = "sbd,sdo->sbo"}> : () -> ()
    %cst = arith.constant dense<0.000000e+00> : vector<16x2x32xf32>
    %6 = tpu.matmul %4, %5, %cst {dimension_numbers = #tpu.dot_dimension_numbers<[2], [1], [1], [2], [0, 0, 0, 1, 1, 2], [0], [0]>} : vector<16x2x32xf32>, vector<16x32x32xf32>, vector<16x2x32xf32> -> vector<16x2x32xf32>
    "tpu.trace_stop"() : () -> ()
    %7 = vector.extract_strided_slice %1 {offsets = [0, 0, 0], sizes = [16, 1, 32], strides = [1, 1, 1]} : vector<16x6x32xf32> to vector<16x1x32xf32>
    %8 = vector.shape_cast %7 : vector<16x1x32xf32> to vector<16x32xf32>
    %9 = vector.shape_cast %8 : vector<16x32xf32> to vector<16x1x32xf32>
    %10 = vector.broadcast %9 : vector<16x1x32xf32> to vector<16x2x32xf32>
    %11 = arith.addf %6, %10 : vector<16x2x32xf32>
    %cst_7 = arith.constant 0.000000e+00 : f32
    %12 = vector.broadcast %cst_7 : f32 to vector<16x2x32xf32>
    %13 = arith.maximumf %11, %12 : vector<16x2x32xf32>
    %c0_8 = arith.constant 0 : index
    %c0_9 = arith.constant 0 : index
    %c0_10 = arith.constant 0 : index
    %c0_11 = arith.constant 0 : index
    %14 = vector.load %arg3[%c0_8, %c0_9, %c0_10, %c0_11] : memref<16x4x32x32xf32, #tpu.memory_space<vmem>>, vector<16x4x32x32xf32>
    %15 = vector.extract_strided_slice %14 {offsets = [0, 0, 0, 0], sizes = [16, 1, 32, 32], strides = [1, 1, 1, 1]} : vector<16x4x32x32xf32> to vector<16x1x32x32xf32>
    %16 = vector.shape_cast %15 : vector<16x1x32x32xf32> to vector<16x32x32xf32>
    "tpu.trace_start"() <{level = 10 : i32, message = "sbd,sdo->sbo"}> : () -> ()
    %cst_12 = arith.constant dense<0.000000e+00> : vector<16x2x32xf32>
    %17 = tpu.matmul %13, %16, %cst_12 {dimension_numbers = #tpu.dot_dimension_numbers<[2], [1], [1], [2], [0, 0, 0, 1, 1, 2], [0], [0]>} : vector<16x2x32xf32>, vector<16x32x32xf32>, vector<16x2x32xf32> -> vector<16x2x32xf32>
    "tpu.trace_stop"() : () -> ()
    %18 = vector.extract_strided_slice %1 {offsets = [0, 1, 0], sizes = [16, 1, 32], strides = [1, 1, 1]} : vector<16x6x32xf32> to vector<16x1x32xf32>
    %19 = vector.shape_cast %18 : vector<16x1x32xf32> to vector<16x32xf32>
    %20 = vector.shape_cast %19 : vector<16x32xf32> to vector<16x1x32xf32>
    %21 = vector.broadcast %20 : vector<16x1x32xf32> to vector<16x2x32xf32>
    %22 = arith.addf %17, %21 : vector<16x2x32xf32>
    %cst_13 = arith.constant 0.000000e+00 : f32
    %23 = vector.broadcast %cst_13 : f32 to vector<16x2x32xf32>
    %24 = arith.maximumf %22, %23 : vector<16x2x32xf32>
    %25 = vector.extract_strided_slice %14 {offsets = [0, 1, 0, 0], sizes = [16, 1, 32, 32], strides = [1, 1, 1, 1]} : vector<16x4x32x32xf32> to vector<16x1x32x32xf32>
    %26 = vector.shape_cast %25 : vector<16x1x32x32xf32> to vector<16x32x32xf32>
    "tpu.trace_start"() <{level = 10 : i32, message = "sbd,sdo->sbo"}> : () -> ()
    %cst_14 = arith.constant dense<0.000000e+00> : vector<16x2x32xf32>
    %27 = tpu.matmul %24, %26, %cst_14 {dimension_numbers = #tpu.dot_dimension_numbers<[2], [1], [1], [2], [0, 0, 0, 1, 1, 2], [0], [0]>} : vector<16x2x32xf32>, vector<16x32x32xf32>, vector<16x2x32xf32> -> vector<16x2x32xf32>
    "tpu.trace_stop"() : () -> ()
    %28 = vector.extract_strided_slice %1 {offsets = [0, 2, 0], sizes = [16, 1, 32], strides = [1, 1, 1]} : vector<16x6x32xf32> to vector<16x1x32xf32>
    %29 = vector.shape_cast %28 : vector<16x1x32xf32> to vector<16x32xf32>
    %30 = vector.shape_cast %29 : vector<16x32xf32> to vector<16x1x32xf32>
    %31 = vector.broadcast %30 : vector<16x1x32xf32> to vector<16x2x32xf32>
    %32 = arith.addf %27, %31 : vector<16x2x32xf32>
    %cst_15 = arith.constant 0.000000e+00 : f32
    %33 = vector.broadcast %cst_15 : f32 to vector<16x2x32xf32>
    %34 = arith.maximumf %32, %33 : vector<16x2x32xf32>
    %35 = vector.extract_strided_slice %14 {offsets = [0, 2, 0, 0], sizes = [16, 1, 32, 32], strides = [1, 1, 1, 1]} : vector<16x4x32x32xf32> to vector<16x1x32x32xf32>
    %36 = vector.shape_cast %35 : vector<16x1x32x32xf32> to vector<16x32x32xf32>
    "tpu.trace_start"() <{level = 10 : i32, message = "sbd,sdo->sbo"}> : () -> ()
    %cst_16 = arith.constant dense<0.000000e+00> : vector<16x2x32xf32>
    %37 = tpu.matmul %34, %36, %cst_16 {dimension_numbers = #tpu.dot_dimension_numbers<[2], [1], [1], [2], [0, 0, 0, 1, 1, 2], [0], [0]>} : vector<16x2x32xf32>, vector<16x32x32xf32>, vector<16x2x32xf32> -> vector<16x2x32xf32>
    "tpu.trace_stop"() : () -> ()
    %38 = vector.extract_strided_slice %1 {offsets = [0, 3, 0], sizes = [16, 1, 32], strides = [1, 1, 1]} : vector<16x6x32xf32> to vector<16x1x32xf32>
    %39 = vector.shape_cast %38 : vector<16x1x32xf32> to vector<16x32xf32>
    %40 = vector.shape_cast %39 : vector<16x32xf32> to vector<16x1x32xf32>
    %41 = vector.broadcast %40 : vector<16x1x32xf32> to vector<16x2x32xf32>
    %42 = arith.addf %37, %41 : vector<16x2x32xf32>
    %cst_17 = arith.constant 0.000000e+00 : f32
    %43 = vector.broadcast %cst_17 : f32 to vector<16x2x32xf32>
    %44 = arith.maximumf %42, %43 : vector<16x2x32xf32>
    %45 = vector.extract_strided_slice %14 {offsets = [0, 3, 0, 0], sizes = [16, 1, 32, 32], strides = [1, 1, 1, 1]} : vector<16x4x32x32xf32> to vector<16x1x32x32xf32>
    %46 = vector.shape_cast %45 : vector<16x1x32x32xf32> to vector<16x32x32xf32>
    "tpu.trace_start"() <{level = 10 : i32, message = "sbd,sdo->sbo"}> : () -> ()
    %cst_18 = arith.constant dense<0.000000e+00> : vector<16x2x32xf32>
    %47 = tpu.matmul %44, %46, %cst_18 {dimension_numbers = #tpu.dot_dimension_numbers<[2], [1], [1], [2], [0, 0, 0, 1, 1, 2], [0], [0]>} : vector<16x2x32xf32>, vector<16x32x32xf32>, vector<16x2x32xf32> -> vector<16x2x32xf32>
    "tpu.trace_stop"() : () -> ()
    %48 = vector.extract_strided_slice %1 {offsets = [0, 4, 0], sizes = [16, 1, 32], strides = [1, 1, 1]} : vector<16x6x32xf32> to vector<16x1x32xf32>
    %49 = vector.shape_cast %48 : vector<16x1x32xf32> to vector<16x32xf32>
    %50 = vector.shape_cast %49 : vector<16x32xf32> to vector<16x1x32xf32>
    %51 = vector.broadcast %50 : vector<16x1x32xf32> to vector<16x2x32xf32>
    %52 = arith.addf %47, %51 : vector<16x2x32xf32>
    %cst_19 = arith.constant 0.000000e+00 : f32
    %53 = vector.broadcast %cst_19 : f32 to vector<16x2x32xf32>
    %54 = arith.maximumf %52, %53 : vector<16x2x32xf32>
    %c0_20 = arith.constant 0 : index
    %c0_21 = arith.constant 0 : index
    %c0_22 = arith.constant 0 : index
    %55 = vector.load %arg4[%c0_20, %c0_21, %c0_22] : memref<16x32x8xf32, #tpu.memory_space<vmem>>, vector<16x32x8xf32>
    "tpu.trace_start"() <{level = 10 : i32, message = "sbd,sde->sbe"}> : () -> ()
    %cst_23 = arith.constant dense<0.000000e+00> : vector<16x2x8xf32>
    %56 = tpu.matmul %54, %55, %cst_23 {dimension_numbers = #tpu.dot_dimension_numbers<[2], [1], [1], [2], [0, 0, 0, 1, 1, 2], [0], [0]>} : vector<16x2x32xf32>, vector<16x32x8xf32>, vector<16x2x8xf32> -> vector<16x2x8xf32>
    "tpu.trace_stop"() : () -> ()
    %57 = vector.extract_strided_slice %1 {offsets = [0, 5, 0], sizes = [16, 1, 8], strides = [1, 1, 1]} : vector<16x6x32xf32> to vector<16x1x8xf32>
    %58 = vector.shape_cast %57 : vector<16x1x8xf32> to vector<16x8xf32>
    %59 = vector.shape_cast %58 : vector<16x8xf32> to vector<16x1x8xf32>
    %60 = vector.broadcast %59 : vector<16x1x8xf32> to vector<16x2x8xf32>
    %61 = arith.addf %56, %60 : vector<16x2x8xf32>
    %cst_24 = arith.constant dense<0xFF800000> : vector<16x2xf32>
    %62 = vector.multi_reduction <maximumf>, %61, %cst_24 [2] : vector<16x2x8xf32> to vector<16x2xf32>
    %63 = vector.shape_cast %62 : vector<16x2xf32> to vector<16x2x1xf32>
    %64 = vector.broadcast %63 : vector<16x2x1xf32> to vector<16x2x8xf32>
    %65 = arith.subf %61, %64 : vector<16x2x8xf32>
    %66 = math.exp %65 : vector<16x2x8xf32>
    %cst_25 = arith.constant dense<0.000000e+00> : vector<16x2xf32>
    %67 = vector.multi_reduction <add>, %66, %cst_25 [2] : vector<16x2x8xf32> to vector<16x2xf32>
    %68 = vector.shape_cast %67 : vector<16x2xf32> to vector<16x2x1xf32>
    %69 = vector.broadcast %68 : vector<16x2x1xf32> to vector<16x2x8xf32>
    %70 = arith.divf %66, %69 : vector<16x2x8xf32>
    %c0_26 = arith.constant 0 : index
    %c0_27 = arith.constant 0 : index
    %c0_28 = arith.constant 0 : index
    %71 = vector.load %arg6[%c0_26, %c0_27, %c0_28] : memref<16x2x8xf32, #tpu.memory_space<vmem>>, vector<16x2x8xf32>
    tpu.vector_store %arg6[%c0_26, %c0_27, %c0_28], %70 {strides = array<i32>} : memref<16x2x8xf32, #tpu.memory_space<vmem>>, vector<16x2x8xf32>,
    return
  }
  func.func @transform_0(%arg0: i32) -> (i32, i32) {
    %c0_i32 = arith.constant 0 : i32
    %c0_i32_0 = arith.constant 0 : i32
    %c0_i32_1 = arith.constant 0 : i32
    return %c0_i32, %c0_i32_0 : i32, i32
  }
  func.func @transform_1(%arg0: i32) -> (i32, i32, i32) {
    %c0_i32 = arith.constant 0 : i32
    %c0_i32_0 = arith.constant 0 : i32
    %c0_i32_1 = arith.constant 0 : i32
    return %arg0, %c0_i32, %c0_i32_0 : i32, i32, i32
  }
  func.func @transform_2(%arg0: i32) -> (i32, i32, i32, i32) {
    %c0_i32 = arith.constant 0 : i32
    %c0_i32_0 = arith.constant 0 : i32
    %c0_i32_1 = arith.constant 0 : i32
    %c0_i32_2 = arith.constant 0 : i32
    return %arg0, %c0_i32, %c0_i32_0, %c0_i32_1 : i32, i32, i32, i32
  }
  func.func @transform_3(%arg0: i32) -> (i32, i32, i32) {
    %c0_i32 = arith.constant 0 : i32
    %c0_i32_0 = arith.constant 0 : i32
    %c0_i32_1 = arith.constant 0 : i32
    return %arg0, %c0_i32, %c0_i32_0 : i32, i32, i32
  }
  func.func @transform_4(%arg0: i32) -> (i32, i32, i32) {
    %c0_i32 = arith.constant 0 : i32
    %c0_i32_0 = arith.constant 0 : i32
    %c0_i32_1 = arith.constant 0 : i32
    return %arg0, %c0_i32, %c0_i32_0 : i32, i32, i32
  }
  func.func @transform_5(%arg0: i32) -> (i32, i32, i32) {
    %c0_i32 = arith.constant 0 : i32
    %c0_i32_0 = arith.constant 0 : i32
    %c0_i32_1 = arith.constant 0 : i32
    return %arg0, %c0_i32, %c0_i32_0 : i32, i32, i32
  }
}

</mosaic_0001>

<bundles_post_ra>
// kernel: mixture_of_experts_forward.1
= control target key start
LH: loop header
LB: loop body
LE: loop exit
PB: predicated region body
PF: predicated region fallthrough
CT: control target
= control target key end

     0   :  { %s3782_s18 = smov 0   ;;  %s4787_s0 = inlined_call_operand.vmem [shape: f32[2,32], index: 0, kind: input, shape index: {}]   ;;  %s4788_s1 = inlined_call_operand.vmem [shape: f32[160,32,32], index: 1, kind: input, shape index: {}]   ;;  %s4789_s2 = inlined_call_operand.vmem [shape: f32[160,4,32,32], index: 2, kind: input, shape index: {}]   ;;  %s4790_s3 = inlined_call_operand.vmem [shape: f32[160,32,8], index: 3, kind: input, shape index: {}]   ;;  %s4791_s4 = inlined_call_operand.vmem [shape: f32[160,6,32], index: 4, kind: input, shape index: {}]   ;;  %s4792_s5 = inlined_call_operand.vmem [shape: f32[160,2,8], index: 5, kind: output, shape index: {}]  }
   0x1 LB: > { %s3537_s19 = sadd.s32 4294967295, %s3750_s18   ;;  %p3541_p0 = scmp.ge.s32.totalorder %s3750_s18, 1  ;;  %s3750_s18 = sphi %s3782_s18, %s15_s18  }
   0x2   : > { %p224_p1 = scmp.lt.s32.totalorder %s3750_s18, 11 }
   0x4   : > { %p225_p2 = pnand %p3541_p0, %p224_p1 }
   0x5   : > { %s3542_s20 = sshll.u32 (!%p225_p2), %s3537_s19, 4 }
   0x6   : > { %228 = sbr.rel (%p225_p2) target bundleno = 1136 (0x470), region = 40  ;;  %p271_p3 = scmp.lt.s32.totalorder (!%p225_p2), %s3542_s20, 159 }
   0xb   : > { %s4798_s20 = smov (!%p271_p3, %s3542_s20), 159  ;;  %v3819_v16 = vld [vmem:[%s4787_s0] sm:$0x3]  ;;  %vm400_vm0 = vcmask 261120   ;;  %vm3044_vm1 = vcmask 58368  }
   0xc   : > { %s3653_s21 = sshll.u32 %s4798_s20, 5  ;;  %s3654_s27 = sshll.u32 %s4798_s20, 7 }
   0xd   : > { %s3798_s24 = scalar_lea.vmem %s4788_s1, %s3653_s21  ;;  %s3893_s30 = scalar_lea.vmem %s4789_s2, %s3654_s27 }
   0xe   : > { %v323_v0 = vld [vmem:[%s3798_s24 + $0x18] sm:$0xff]  ;;  %v322_v4 = vld [vmem:[%s3798_s24 + $0x10] sm:$0xff]  ;;  %v321_v8 = vld [vmem:[%s3798_s24 + $0x8] sm:$0xff]  ;;  %s3552_s6 = sshll.u32 %s4798_s20, 3  ;;  %s4334_s12 = scalar_lea.vmem %s4790_s3, %s3653_s21 }
   0xf   : > { %v327_v1 = vld [vmem:[%s3798_s24 + $0x38] sm:$0xff]  ;;  %416 = vmatpush.msra.mxu0 %v323_v0  ;;  %v326_v5 = vld [vmem:[%s3798_s24 + $0x30] sm:$0xff]  ;;  %v325_v9 = vld [vmem:[%s3798_s24 + $0x28] sm:$0xff]  ;;  %s3941_s9 = scalar_lea.vmem %s4791_s4, %s3552_s6  ;;  %s3554_s13 = sshll.u32 %s4798_s20, 1 }
  0x10   : > { %v331_v2 = vld [vmem:[%s3798_s24 + $0x58] sm:$0xff]  ;;  %436 = vmatpush.msra.mxu1 %v327_v1  ;;  %v330_v6 = vld [vmem:[%s3798_s24 + $0x50] sm:$0xff]  ;;  %v329_v10 = vld [vmem:[%s3798_s24 + $0x48] sm:$0xff]  ;;  %s4660_s16 = scalar_lea.vmem %s4792_s5, %s3554_s13 }
  0x11   : > { %v335_v3 = vld [vmem:[%s3798_s24 + $0x78] sm:$0xff]  ;;  %456 = vmatpush.msra.mxu2 %v331_v2  ;;  %v334_v7 = vld [vmem:[%s3798_s24 + $0x70] sm:$0xff]  ;;  %417 = vmatpush.msra.mxu0 %v322_v4  ;;  %v333_v11 = vld [vmem:[%s3798_s24 + $0x68] sm:$0xff] }
  0x12   : > { %476 = vmatpush.msra.mxu3 %v335_v3  ;;  %437 = vmatpush.msra.mxu1 %v326_v5  ;;  %v320_v12 = vld [vmem:[%s3798_s24] sm:$0xff]  ;;  %v339_v17 = vld [vmem:[%s3798_s24 + $0x98] sm:$0xff]  ;;  %v338_v21 = vld [vmem:[%s3798_s24 + $0x90] sm:$0xff] }
  0x13   : > { %457 = vmatpush.msra.mxu2 %v330_v6  ;;  %v324_v13 = vld [vmem:[%s3798_s24 + $0x20] sm:$0xff]  ;;  %418 = vmatpush.msra.mxu0 %v321_v8  ;;  %v343_v18 = vld [vmem:[%s3798_s24 + $0xb8] sm:$0xff]  ;;  %v342_v22 = vld [vmem:[%s3798_s24 + $0xb0] sm:$0xff] }
  0x14   : > { %477 = vmatpush.msra.mxu3 %v334_v7  ;;  %438 = vmatpush.msra.mxu1 %v325_v9  ;;  %v328_v14 = vld [vmem:[%s3798_s24 + $0x40] sm:$0xff]  ;;  %v347_v19 = vld [vmem:[%s3798_s24 + $0xd8] sm:$0xff]  ;;  %v346_v23 = vld [vmem:[%s3798_s24 + $0xd0] sm:$0xff] }
  0x15   : > { %v332_v15 = vld [vmem:[%s3798_s24 + $0x60] sm:$0xff]  ;;  %458 = vmatpush.msra.mxu2 %v329_v10  ;;  %419 = vmatpush.msra.mxu0 %v320_v12  ;;  %v351_v20 = vld [vmem:[%s3798_s24 + $0xf8] sm:$0xff]  ;;  %v350_v24 = vld [vmem:[%s3798_s24 + $0xf0] sm:$0xff] }
  0x16   : > { %478 = vmatpush.msra.mxu3 %v333_v11  ;;  %439 = vmatpush.msra.mxu1 %v324_v13  ;;  %v337_v25 = vld [vmem:[%s3798_s24 + $0x88] sm:$0xff]  ;;  %v336_v29 = vld [vmem:[%s3798_s24 + $0x80] sm:$0xff]  ;;  %v355_v33 = vld [vmem:[%s3798_s24 + $0x118] sm:$0xff] }
  0x17   : > { %459 = vmatpush.msra.mxu2 %v328_v14  ;;  %3555 = vmatmul.msk.f32.vlgmr.msra.gmra.mxu0 %vm400_vm0, %v3819_v16  ;;  %v341_v26 = vld [vmem:[%s3798_s24 + $0xa8] sm:$0xff]  ;;  %v340_v30 = vld [vmem:[%s3798_s24 + $0xa0] sm:$0xff]  ;;  %v359_v34 = vld [vmem:[%s3798_s24 + $0x138] sm:$0xff] }
  0x18   : > { %479 = vmatpush.msra.mxu3 %v332_v15  ;;  %3556 = vmatmul.msk.f32.vlgmr.msra.gmra.mxu1 %vm400_vm0, %v3819_v16  ;;  %v345_v27 = vld [vmem:[%s3798_s24 + $0xc8] sm:$0xff]  ;;  %v344_v31 = vld [vmem:[%s3798_s24 + $0xc0] sm:$0xff]  ;;  %v363_v35 = vld [vmem:[%s3798_s24 + $0x158] sm:$0xff] }
  0x19   : > { %3557 = vmatmul.msk.f32.vlgmr.msra.gmra.mxu2 %vm400_vm0, %v3819_v16  ;;  %3558 = vmatmul.msk.f32.vlgmr.msra.gmra.mxu3 %vm400_vm0, %v3819_v16  ;;  %v349_v28 = vld [vmem:[%s3798_s24 + $0xe8] sm:$0xff]  ;;  %v348_v32 = vld [vmem:[%s3798_s24 + $0xe0] sm:$0xff]  ;;  %v367_v36 = vld [vmem:[%s3798_s24 + $0x178] sm:$0xff] }
  0x1a   : > { %496 = vmatpush.msrb.mxu0 %v339_v17  ;;  %516 = vmatpush.msrb.mxu1 %v343_v18  ;;  %v354_v37 = vld [vmem:[%s3798_s24 + $0x110] sm:$0xff]  ;;  %v353_v41 = vld [vmem:[%s3798_s24 + $0x108] sm:$0xff]  ;;  %v352_v45 = vld [vmem:[%s3798_s24 + $0x100] sm:$0xff] }
  0x1b   : > { %536 = vmatpush.msrb.mxu2 %v347_v19  ;;  %556 = vmatpush.msrb.mxu3 %v351_v20  ;;  %v358_v38 = vld [vmem:[%s3798_s24 + $0x130] sm:$0xff]  ;;  %v357_v42 = vld [vmem:[%s3798_s24 + $0x128] sm:$0xff]  ;;  %v356_v46 = vld [vmem:[%s3798_s24 + $0x120] sm:$0xff] }
  0x1c   : > { %497 = vmatpush.msrb.mxu0 %v338_v21  ;;  %517 = vmatpush.msrb.mxu1 %v342_v22  ;;  %v362_v39 = vld [vmem:[%s3798_s24 + $0x150] sm:$0xff]  ;;  %v361_v43 = vld [vmem:[%s3798_s24 + $0x148] sm:$0xff]  ;;  %v360_v47 = vld [vmem:[%s3798_s24 + $0x140] sm:$0xff] }
  0x1d   : > { %537 = vmatpush.msrb.mxu2 %v346_v23  ;;  %557 = vmatpush.msrb.mxu3 %v350_v24  ;;  %v366_v40 = vld [vmem:[%s3798_s24 + $0x170] sm:$0xff]  ;;  %v365_v44 = vld [vmem:[%s3798_s24 + $0x168] sm:$0xff]  ;;  %v364_v48 = vld [vmem:[%s3798_s24 + $0x160] sm:$0xff] }
  0x1e   : > { %498 = vmatpush.msrb.mxu0 %v337_v25  ;;  %518 = vmatpush.msrb.mxu1 %v341_v26  ;;  %v371_v49 = vld [vmem:[%s3798_s24 + $0x198] sm:$0xff]  ;;  %v370_v53 = vld [vmem:[%s3798_s24 + $0x190] sm:$0xff]  ;;  %v369_v57 = vld [vmem:[%s3798_s24 + $0x188] sm:$0xff] }
  0x1f   : > { %538 = vmatpush.msrb.mxu2 %v345_v27  ;;  %558 = vmatpush.msrb.mxu3 %v349_v28  ;;  %v379_v50 = vld [vmem:[%s3798_s24 + $0x1d8] sm:$0xff]  ;;  %v378_v54 = vld [vmem:[%s3798_s24 + $0x1d0] sm:$0xff]  ;;  %v377_v58 = vld [vmem:[%s3798_s24 + $0x1c8] sm:$0xff] }
  0x20   : > { %499 = vmatpush.msrb.mxu0 %v336_v29  ;;  %519 = vmatpush.msrb.mxu1 %v340_v30  ;;  %v383_v51 = vld [vmem:[%s3798_s24 + $0x1f8] sm:$0xff]  ;;  %v382_v55 = vld [vmem:[%s3798_s24 + $0x1f0] sm:$0xff]  ;;  %v381_v59 = vld [vmem:[%s3798_s24 + $0x1e8] sm:$0xff] }
  0x21   : > { %539 = vmatpush.msrb.mxu2 %v344_v31  ;;  %559 = vmatpush.msrb.mxu3 %v348_v32  ;;  %v375_v52 = vld [vmem:[%s3798_s24 + $0x1b8] sm:$0xff]  ;;  %v374_v56 = vld [vmem:[%s3798_s24 + $0x1b0] sm:$0xff]  ;;  %v373_v60 = vld [vmem:[%s3798_s24 + $0x1a8] sm:$0xff] }
  0x22   : > { %3559 = vmatmul.msk.f32.vlgmr.msrb.gmra.mxu0 %vm400_vm0, %v3819_v16  ;;  %3560 = vmatmul.msk.f32.vlgmr.msrb.gmra.mxu1 %vm400_vm0, %v3819_v16  ;;  %v368_v61 = vld [vmem:[%s3798_s24 + $0x180] sm:$0xff]  ;;  %v743_v1 = vld [vmem:[%s3893_s30 + $0x18] sm:$0xff]  ;;  %v742_v3 = vld [vmem:[%s3893_s30 + $0x10] sm:$0xff] }
  0x23   : > { %3561 = vmatmul.msk.f32.vlgmr.msrb.gmra.mxu2 %vm400_vm0, %v3819_v16  ;;  %3562 = vmatmul.msk.f32.vlgmr.msrb.gmra.mxu3 %vm400_vm0, %v3819_v16  ;;  %v376_v62 = vld [vmem:[%s3798_s24 + $0x1c0] sm:$0xff]  ;;  %v759_v2 = vld [vmem:[%s3893_s30 + $0x98] sm:$0xff]  ;;  %v758_v4 = vld [vmem:[%s3893_s30 + $0x90] sm:$0xff] }
  0x24   : > { %576 = vmatpush.msra.mxu0 %v355_v33  ;;  %596 = vmatpush.msra.mxu1 %v359_v34  ;;  %v380_v63 = vld [vmem:[%s3798_s24 + $0x1e0] sm:$0xff]  ;;  %v741_v5 = vld [vmem:[%s3893_s30 + $0x8] sm:$0xff]  ;;  %v775_v7 = vld [vmem:[%s3893_s30 + $0x118] sm:$0xff] }
  0x25   : > { %616 = vmatpush.msra.mxu2 %v363_v35  ;;  %636 = vmatpush.msra.mxu3 %v367_v36  ;;  %v372_v0 = vld [vmem:[%s3798_s24 + $0x1a0] sm:$0xff]  ;;  %v757_v6 = vld [vmem:[%s3893_s30 + $0x88] sm:$0xff]  ;;  %v791_v10 = vld [vmem:[%s3893_s30 + $0x198] sm:$0xff] }
  0x26   : > { %577 = vmatpush.msra.mxu0 %v354_v37  ;;  %597 = vmatpush.msra.mxu1 %v358_v38  ;;  %v740_v8 = vld [vmem:[%s3893_s30] sm:$0xff]  ;;  %v774_v11 = vld [vmem:[%s3893_s30 + $0x110] sm:$0xff]  ;;  %v807_v13 = vld [vmem:[%s3893_s30 + $0x218] sm:$0xff] }
  0x27   : > { %617 = vmatpush.msra.mxu2 %v362_v39  ;;  %637 = vmatpush.msra.mxu3 %v366_v40  ;;  %v756_v9 = vld [vmem:[%s3893_s30 + $0x80] sm:$0xff]  ;;  %v790_v12 = vld [vmem:[%s3893_s30 + $0x190] sm:$0xff]  ;;  %v823_v14 = vld [vmem:[%s3893_s30 + $0x298] sm:$0xff] }
  0x28   : > { %578 = vmatpush.msra.mxu0 %v353_v41  ;;  %598 = vmatpush.msra.mxu1 %v357_v42  ;;  %v773_v15 = vld [vmem:[%s3893_s30 + $0x108] sm:$0xff]  ;;  %v806_v17 = vld [vmem:[%s3893_s30 + $0x210] sm:$0xff]  ;;  %v772_v19 = vld [vmem:[%s3893_s30 + $0x100] sm:$0xff] }
  0x29   : > { %618 = vmatpush.msra.mxu2 %v361_v43  ;;  %638 = vmatpush.msra.mxu3 %v365_v44  ;;  %v822_v18 = vld [vmem:[%s3893_s30 + $0x290] sm:$0xff]  ;;  %v788_v20 = vld [vmem:[%s3893_s30 + $0x180] sm:$0xff]  ;;  %v805_v21 = vld [vmem:[%s3893_s30 + $0x208] sm:$0xff] }
  0x2a   : > { %579 = vmatpush.msra.mxu0 %v352_v45  ;;  %599 = vmatpush.msra.mxu1 %v356_v46  ;;  %v821_v22 = vld [vmem:[%s3893_s30 + $0x288] sm:$0xff]  ;;  %v804_v23 = vld [vmem:[%s3893_s30 + $0x200] sm:$0xff]  ;;  %v839_v25 = vld [vmem:[%s3893_s30 + $0x318] sm:$0xff] }
  0x2b   : > { %619 = vmatpush.msra.mxu2 %v360_v47  ;;  %639 = vmatpush.msra.mxu3 %v364_v48  ;;  %v820_v24 = vld [vmem:[%s3893_s30 + $0x280] sm:$0xff]  ;;  %v855_v26 = vld [vmem:[%s3893_s30 + $0x398] sm:$0xff]  ;;  %v838_v27 = vld [vmem:[%s3893_s30 + $0x310] sm:$0xff] }
  0x2c   : > { %3563 = vmatmul.msk.f32.vlgmr.msra.gmra.mxu0 %vm400_vm0, %v3819_v16  ;;  %3564 = vmatmul.msk.f32.vlgmr.msra.gmra.mxu1 %vm400_vm0, %v3819_v16  ;;  %v854_v28 = vld [vmem:[%s3893_s30 + $0x390] sm:$0xff]  ;;  %v837_v29 = vld [vmem:[%s3893_s30 + $0x308] sm:$0xff]  ;;  %v836_v31 = vld [vmem:[%s3893_s30 + $0x300] sm:$0xff] }
  0x2d   : > { %3565 = vmatmul.msk.f32.vlgmr.msra.gmra.mxu2 %vm400_vm0, %v3819_v16  ;;  %3566 = vmatmul.msk.f32.vlgmr.msra.gmra.mxu3 %vm400_vm0, %v3819_v16  ;;  %v853_v30 = vld [vmem:[%s3893_s30 + $0x388] sm:$0xff]  ;;  %v852_v32 = vld [vmem:[%s3893_s30 + $0x380] sm:$0xff]  ;;  %v3954_v41 = vld [vmem:[%s3941_s9 + $0x10] sm:$0x3f] }
  0x2e   : > { %656 = vmatpush.msrb.mxu0 %v371_v49  ;;  %696 = vmatpush.msrb.mxu2 %v379_v50  ;;  %v3946_v33 = vld [vmem:[%s3941_s9] sm:$0x3f]  ;;  %v3949_v34 = vld [vmem:[%s3941_s9 + $0x8] sm:$0x3f]  ;;  %v3957_v42 = vld [vmem:[%s3941_s9 + $0x18] sm:$0x3f] }
  0x2f   : > { %716 = vmatpush.msrb.mxu3 %v383_v51  ;;  %676 = vmatpush.msrb.mxu1 %v375_v52  ;;  %v384_v35 = vperm.slane %v3946_v33, 0  ;;  %v385_v36 = vperm.slane %v3949_v34, 0  ;;  %v871_v45 = vld [vmem:[%s3893_s30 + $0x418] sm:$0xff]  ;;  %v386_v47 = vperm.slane %v3954_v41, 0  ;;  %v387_v48 = vperm.slane %v3957_v42, 0  ;;  %v870_v51 = vld [vmem:[%s3893_s30 + $0x410] sm:$0xff] }
  0x30   : > { %657 = vmatpush.msrb.mxu0 %v370_v53  ;;  %697 = vmatpush.msrb.mxu2 %v378_v54  ;;  %v887_v46 = vld [vmem:[%s3893_s30 + $0x498] sm:$0xff]  ;;  %v3964_v49 = vld [vmem:[%s3941_s9 + $0x20] sm:$0x3f]  ;;  %v3967_v50 = vld [vmem:[%s3941_s9 + $0x28] sm:$0x3f] }
  0x31   : > { %717 = vmatpush.msrb.mxu3 %v382_v55  ;;  %677 = vmatpush.msrb.mxu1 %v374_v56  ;;  %v886_v52 = vld [vmem:[%s3893_s30 + $0x490] sm:$0xff]  ;;  %v388_v55 = vperm.slane %v3964_v49, 0  ;;  %v389_v56 = vperm.slane %v3967_v50, 0 }
  0x32   : > { %658 = vmatpush.msrb.mxu0 %v369_v57  ;;  %698 = vmatpush.msrb.mxu2 %v377_v58  ;;  %v869_v57 = vld [vmem:[%s3893_s30 + $0x408] sm:$0xff] }
  0x33   : > { %718 = vmatpush.msrb.mxu3 %v381_v59  ;;  %678 = vmatpush.msrb.mxu1 %v373_v60  ;;  %v885_v58 = vld [vmem:[%s3893_s30 + $0x488] sm:$0xff] }
  0x34   : > { %659 = vmatpush.msrb.mxu0 %v368_v61  ;;  %699 = vmatpush.msrb.mxu2 %v376_v62 }
  0x35   : > { %719 = vmatpush.msrb.mxu3 %v380_v63  ;;  %3567 = vmatmul.msk.f32.vlgmr.msrb.gmra.mxu0 %vm400_vm0, %v3819_v16 }
  0x36   : > { %3569 = vmatmul.msk.f32.vlgmr.msrb.gmra.mxu2 %vm400_vm0, %v3819_v16  ;;  %3570 = vmatmul.msk.f32.vlgmr.msrb.gmra.mxu3 %vm400_vm0, %v3819_v16 }
  0x37   : > { %679 = vmatpush.msrb.mxu1 %v372_v0  ;;  %1027 = vmatpush.msra.mxu0 %v743_v1  ;;  %v3978_v1 = vld [vmem:[%s3941_s9 + $0x30] sm:$0x3f] }
  0x38   : > { %3568 = vmatmul.msk.f32.vlgmr.msrb.gmra.mxu1 %vm400_vm0, %v3819_v16  ;;  %1073 = vmatpush.msra.mxu2 %v775_v7  ;;  %v789_v16 = vld [vmem:[%s3893_s30 + $0x188] sm:$0xff]  ;;  %v903_v7 = vld [vmem:[%s3893_s30 + $0x518] sm:$0xff] }
  0x39   : > { %1050 = vmatpush.msra.mxu1 %v759_v2  ;;  %1028 = vmatpush.msra.mxu0 %v742_v3  ;;  %v868_v2 = vld [vmem:[%s3893_s30 + $0x400] sm:$0xff] }
  0x3a   : > { %1096 = vmatpush.msra.mxu3 %v791_v10  ;;  %1074 = vmatpush.msra.mxu2 %v774_v11  ;;  %v884_v3 = vld [vmem:[%s3893_s30 + $0x480] sm:$0xff] }
  0x3b   : > { %1051 = vmatpush.msra.mxu1 %v758_v4  ;;  %1029 = vmatpush.msra.mxu0 %v741_v5  ;;  %v3990_v11 = vld [vmem:[%s3941_s9 + $0x40] sm:$0x3f] }
  0x3c   : > { %1097 = vmatpush.msra.mxu3 %v790_v12  ;;  %1075 = vmatpush.msra.mxu2 %v773_v15  ;;  %v902_v12 = vld [vmem:[%s3893_s30 + $0x510] sm:$0xff] }
  0x3d   : > { %1052 = vmatpush.msra.mxu1 %v757_v6  ;;  %1030 = vmatpush.msra.mxu0 %v740_v8  ;;  %v3983_v6 = vld [vmem:[%s3941_s9 + $0x38] sm:$0x3f] }
  0x3e   : > { %1098 = vmatpush.msra.mxu3 %v789_v16  ;;  %1076 = vmatpush.msra.mxu2 %v772_v19  ;;  %v919_v8 = vld [vmem:[%s3893_s30 + $0x598] sm:$0xff]  ;;  %v391_v15 = vperm.slane %v3983_v6, 0  ;;  %v3997_v16 = vld [vmem:[%s3941_s9 + $0x48] sm:$0x3f] }
  0x3f   : > { %1053 = vmatpush.msra.mxu1 %v756_v9  ;;  %1119 = vmatpush.msrb.mxu0 %v807_v13  ;;  %v918_v13 = vld [vmem:[%s3893_s30 + $0x590] sm:$0xff]  ;;  %v901_v19 = vld [vmem:[%s3893_s30 + $0x508] sm:$0xff] }
  0x40   : > { %1099 = vmatpush.msra.mxu3 %v788_v20  ;;  %1165 = vmatpush.msrb.mxu2 %v839_v25  ;;  %v917_v20 = vld [vmem:[%s3893_s30 + $0x588] sm:$0xff]  ;;  %v392_v25 = vperm.slane %v3990_v11, 0 }
  0x41   : > { %1142 = vmatpush.msrb.mxu1 %v823_v14  ;;  %1120 = vmatpush.msrb.mxu0 %v806_v17  ;;  %v390_v14 = vperm.slane %v3978_v1, 0  ;;  %v935_v17 = vld [vmem:[%s3893_s30 + $0x618] sm:$0xff] }
  0x42   : > { %1188 = vmatpush.msrb.mxu3 %v855_v26  ;;  %1166 = vmatpush.msrb.mxu2 %v838_v27  ;;  %v393_v26 = vperm.slane %v3997_v16, 0  ;;  %v900_v27 = vld [vmem:[%s3893_s30 + $0x500] sm:$0xff] }
  0x43   : > { %1143 = vmatpush.msrb.mxu1 %v822_v18  ;;  %1121 = vmatpush.msrb.mxu0 %v805_v21  ;;  %v951_v18 = vld [vmem:[%s3893_s30 + $0x698] sm:$0xff]  ;;  %v934_v21 = vld [vmem:[%s3893_s30 + $0x610] sm:$0xff] }
  0x44   : > { %1189 = vmatpush.msrb.mxu3 %v854_v28  ;;  %1167 = vmatpush.msrb.mxu2 %v837_v29  ;;  %v916_v28 = vld [vmem:[%s3893_s30 + $0x580] sm:$0xff] }
  0x45   : > { %1144 = vmatpush.msrb.mxu1 %v821_v22  ;;  %1122 = vmatpush.msrb.mxu0 %v804_v23  ;;  %v950_v22 = vld [vmem:[%s3893_s30 + $0x690] sm:$0xff] }
  0x46   : > { %1190 = vmatpush.msrb.mxu3 %v853_v30  ;;  %1168 = vmatpush.msrb.mxu2 %v836_v31  ;;  %v933_v31 = vld [vmem:[%s3893_s30 + $0x608] sm:$0xff] }
  0x47   : > { %1145 = vmatpush.msrb.mxu1 %v820_v24 }
  0x48   : > { %1191 = vmatpush.msrb.mxu3 %v852_v32  ;;  %v949_v32 = vld [vmem:[%s3893_s30 + $0x688] sm:$0xff] }
  0x94   : > { %v421_v37 = vpop.f32.mrf.mxu0 }
  0x95   : > { %v441_v38 = vpop.f32.mrf.mxu1  ;;  %v422_v39 = vadd.f32 %v421_v37, %v384_v35 }
  0x96   : > { %v442_v40 = vadd.f32 %v441_v38, %v385_v36 }
  0x97   : > { %v724_v43 = vmax.f32 %v422_v39, 0.0  ;;  %v4014_v39 = vld [vmem:[%s3941_s9 + $0x50] sm:$0x3f] }
  0x98   : > { %v725_v44 = vmax.f32 %v442_v40, 0.0  ;;  %v932_v40 = vld [vmem:[%s3893_s30 + $0x600] sm:$0xff] }
  0x99   : > { %3571 = vmatmul.msk.f32.vlgmr.msra.gmra.mxu0 %vm400_vm0, %v724_v43  ;;  %v967_v43 = vld [vmem:[%s3893_s30 + $0x718] sm:$0xff] }
  0x9a   : > { %3572 = vmatmul.msk.f32.vlgmr.msra.gmra.mxu1 %vm400_vm0, %v725_v44  ;;  %1211 = vmatpush.msra.mxu0 %v871_v45 }
  0x9b   : > { %1234 = vmatpush.msra.mxu1 %v887_v46  ;;  %v4019_v46 = vld [vmem:[%s3941_s9 + $0x58] sm:$0x3f] }
  0x9c   : > { %v461_v53 = vpop.f32.mrf.mxu2  ;;  %v481_v54 = vpop.f32.mrf.mxu3  ;;  %1212 = vmatpush.msra.mxu0 %v870_v51 }
  0x9d   : > { %v462_v59 = vadd.f32 %v461_v53, %v386_v47  ;;  %v482_v60 = vadd.f32 %v481_v54, %v387_v48  ;;  %1235 = vmatpush.msra.mxu1 %v886_v52  ;;  %v983_v47 = vld [vmem:[%s3893_s30 + $0x798] sm:$0xff]  ;;  %v948_v48 = vld [vmem:[%s3893_s30 + $0x680] sm:$0xff]  ;;  %v966_v54 = vld [vmem:[%s3893_s30 + $0x710] sm:$0xff] }
  0x9e   : > { %1213 = vmatpush.msra.mxu0 %v869_v57  ;;  %v4026_v53 = vld [vmem:[%s3941_s9 + $0x60] sm:$0x3f]  ;;  %v395_v57 = vperm.slane %v4019_v46, 0 }
  0x9f   : > { %v726_v61 = vmax.f32 %v462_v59, 0.0  ;;  %v727_v62 = vmax.f32 %v482_v60, 0.0  ;;  %v501_v63 = vpop.f32.mrf.mxu0  ;;  %v521_v0 = vpop.f32.mrf.mxu1  ;;  %1236 = vmatpush.msra.mxu1 %v885_v58  ;;  %v747_v58 = vld [vmem:[%s3893_s30 + $0x38] sm:$0xff]  ;;  %v965_v60 = vld [vmem:[%s3893_s30 + $0x708] sm:$0xff] }
  0xa0   : > { %v502_v4 = vadd.f32 %v501_v63, %v388_v55  ;;  %v522_v5 = vadd.f32 %v521_v0, %v389_v56  ;;  %1214 = vmatpush.msra.mxu0 %v868_v2  ;;  %v982_v55 = vld [vmem:[%s3893_s30 + $0x790] sm:$0xff]  ;;  %v394_v56 = vperm.slane %v4014_v39, 0  ;;  %v763_v59 = vld [vmem:[%s3893_s30 + $0xb8] sm:$0xff]  ;;  %v4040_v63 = vld [vmem:[%s3941_s9 + $0x68] sm:$0x3f] }
  0xa1   : > { %3573 = vmatmul.msk.f32.vlgmr.msra.gmra.mxu2 %vm400_vm0, %v726_v61  ;;  %3574 = vmatmul.msk.f32.vlgmr.msra.gmra.mxu3 %vm400_vm0, %v727_v62  ;;  %v981_v61 = vld [vmem:[%s3893_s30 + $0x788] sm:$0xff]  ;;  %v396_v62 = vperm.slane %v4026_v53, 0 }
  0xa2   : > { %v728_v9 = vmax.f32 %v502_v4, 0.0  ;;  %v729_v10 = vmax.f32 %v522_v5, 0.0  ;;  %1237 = vmatpush.msra.mxu1 %v884_v3  ;;  %1257 = vmatpush.msra.mxu2 %v903_v7  ;;  %v964_v3 = vld [vmem:[%s3893_s30 + $0x700] sm:$0xff] }
  0xa3   : > { %1280 = vmatpush.msra.mxu3 %v919_v8  ;;  %v980_v4 = vld [vmem:[%s3893_s30 + $0x780] sm:$0xff] }
  0xa4   : > { %3575 = vmatmul.msk.f32.vlgmr.msrb.gmra.mxu0 %vm400_vm0, %v728_v9  ;;  %3576 = vmatmul.msk.f32.vlgmr.msrb.gmra.mxu1 %vm400_vm0, %v729_v10  ;;  %v397_v9 = vperm.slane %v4040_v63, 0 }
  0xa5   : > { %1258 = vmatpush.msra.mxu2 %v902_v12  ;;  %1281 = vmatpush.msra.mxu3 %v918_v13 }
  0xa6   : > { %v541_v23 = vpop.f32.mrf.mxu2  ;;  %v561_v24 = vpop.f32.mrf.mxu3  ;;  %1303 = vmatpush.msrb.mxu0 %v935_v17  ;;  %1326 = vmatpush.msrb.mxu1 %v951_v18 }
  0xa7   : > { %v542_v29 = vadd.f32 %v541_v23, %v390_v14  ;;  %v562_v30 = vadd.f32 %v561_v24, %v391_v15  ;;  %1259 = vmatpush.msra.mxu2 %v901_v19  ;;  %1282 = vmatpush.msra.mxu3 %v917_v20  ;;  %v4046_v14 = vld [vmem:[%s3941_s9 + $0x70] sm:$0x3f]  ;;  %v4049_v15 = vld [vmem:[%s3941_s9 + $0x78] sm:$0x3f] }
  0xa8   : > { %1304 = vmatpush.msrb.mxu0 %v934_v21  ;;  %1327 = vmatpush.msrb.mxu1 %v950_v22  ;;  %v398_v19 = vperm.slane %v4046_v14, 0  ;;  %v399_v20 = vperm.slane %v4049_v15, 0 }
  0xa9   : > { %v730_v35 = vmax.f32 %v542_v29, 0.0  ;;  %v731_v36 = vmax.f32 %v562_v30, 0.0  ;;  %v581_v37 = vpop.f32.mrf.mxu0  ;;  %v601_v38 = vpop.f32.mrf.mxu1  ;;  %1260 = vmatpush.msra.mxu2 %v900_v27  ;;  %1283 = vmatpush.msra.mxu3 %v916_v28  ;;  %v746_v29 = vld [vmem:[%s3893_s30 + $0x30] sm:$0xff] }
  0xaa   : > { %v582_v44 = vadd.f32 %v581_v37, %v392_v25  ;;  %v602_v45 = vadd.f32 %v601_v38, %v393_v26  ;;  %1305 = vmatpush.msrb.mxu0 %v933_v31  ;;  %1328 = vmatpush.msrb.mxu1 %v949_v32  ;;  %v762_v30 = vld [vmem:[%s3893_s30 + $0xb0] sm:$0xff]  ;;  %v745_v31 = vld [vmem:[%s3893_s30 + $0x28] sm:$0xff]  ;;  %v811_v37 = vld [vmem:[%s3893_s30 + $0x238] sm:$0xff] }
  0xab   : > { %3577 = vmatmul.msk.f32.vlgmr.msrb.gmra.mxu2 %vm400_vm0, %v730_v35  ;;  %3578 = vmatmul.msk.f32.vlgmr.msrb.gmra.mxu3 %vm400_vm0, %v731_v36  ;;  %v761_v32 = vld [vmem:[%s3893_s30 + $0xa8] sm:$0xff]  ;;  %v744_v35 = vld [vmem:[%s3893_s30 + $0x20] sm:$0xff]  ;;  %v827_v38 = vld [vmem:[%s3893_s30 + $0x2b8] sm:$0xff] }
  0xac   : > { %v732_v51 = vmax.f32 %v582_v44, 0.0  ;;  %v733_v52 = vmax.f32 %v602_v45, 0.0  ;;  %1306 = vmatpush.msrb.mxu0 %v932_v40  ;;  %1349 = vmatpush.msrb.mxu2 %v967_v43  ;;  %v760_v36 = vld [vmem:[%s3893_s30 + $0xa0] sm:$0xff]  ;;  %v810_v40 = vld [vmem:[%s3893_s30 + $0x230] sm:$0xff]  ;;  %v779_v44 = vld [vmem:[%s3893_s30 + $0x138] sm:$0xff] }
  0xad   : > { %1372 = vmatpush.msrb.mxu3 %v983_v47  ;;  %1329 = vmatpush.msrb.mxu1 %v948_v48  ;;  %v826_v43 = vld [vmem:[%s3893_s30 + $0x2b0] sm:$0xff]  ;;  %v795_v45 = vld [vmem:[%s3893_s30 + $0x1b8] sm:$0xff]  ;;  %v809_v47 = vld [vmem:[%s3893_s30 + $0x228] sm:$0xff] }
  0xae   : > { %3579 = vmatmul.msk.f32.vlgmr.msra.gmra.mxu0 %vm400_vm0, %v732_v51  ;;  %3580 = vmatmul.msk.f32.vlgmr.msra.gmra.mxu1 %vm400_vm0, %v733_v52  ;;  %v825_v48 = vld [vmem:[%s3893_s30 + $0x2a8] sm:$0xff]  ;;  %v778_v51 = vld [vmem:[%s3893_s30 + $0x130] sm:$0xff] }
  0xaf   : > { %1350 = vmatpush.msrb.mxu2 %v966_v54  ;;  %1373 = vmatpush.msrb.mxu3 %v982_v55  ;;  %v794_v52 = vld [vmem:[%s3893_s30 + $0x1b0] sm:$0xff]  ;;  %v808_v54 = vld [vmem:[%s3893_s30 + $0x220] sm:$0xff] }
  0xb0   : > { %v621_v0 = vpop.f32.mrf.mxu2  ;;  %v641_v2 = vpop.f32.mrf.mxu3  ;;  %1427 = vmatpush.msra.mxu0 %v747_v58  ;;  %1450 = vmatpush.msra.mxu1 %v763_v59  ;;  %v824_v55 = vld [vmem:[%s3893_s30 + $0x2a0] sm:$0xff] }
  0xb1   : > { %v622_v5 = vadd.f32 %v621_v0, %v394_v56  ;;  %v642_v7 = vadd.f32 %v641_v2, %v395_v57  ;;  %1351 = vmatpush.msrb.mxu2 %v965_v60  ;;  %1374 = vmatpush.msrb.mxu3 %v981_v61  ;;  %v777_v56 = vld [vmem:[%s3893_s30 + $0x128] sm:$0xff]  ;;  %v776_v58 = vld [vmem:[%s3893_s30 + $0x120] sm:$0xff]  ;;  %v843_v60 = vld [vmem:[%s3893_s30 + $0x338] sm:$0xff] }
  0xb2   : > { %v661_v8 = vpop.f32.mrf.mxu0  ;;  %1428 = vmatpush.msra.mxu0 %v746_v29  ;;  %1451 = vmatpush.msra.mxu1 %v762_v30  ;;  %v793_v57 = vld [vmem:[%s3893_s30 + $0x1a8] sm:$0xff]  ;;  %v792_v59 = vld [vmem:[%s3893_s30 + $0x1a0] sm:$0xff]  ;;  %v859_v61 = vld [vmem:[%s3893_s30 + $0x3b8] sm:$0xff] }
  0xb3   : > { %v734_v10 = vmax.f32 %v622_v5, 0.0  ;;  %v735_v12 = vmax.f32 %v642_v7, 0.0  ;;  %v662_v13 = vadd.f32 %v661_v8, %v396_v62  ;;  %1352 = vmatpush.msrb.mxu2 %v964_v3  ;;  %1375 = vmatpush.msrb.mxu3 %v980_v4  ;;  %v842_v62 = vld [vmem:[%s3893_s30 + $0x330] sm:$0xff]  ;;  %v841_v2 = vld [vmem:[%s3893_s30 + $0x328] sm:$0xff]  ;;  %v996_v4 = vperm.slane %v3946_v33, 1  ;;  %v840_v7 = vld [vmem:[%s3893_s30 + $0x320] sm:$0xff] }
  0xb4   : > { %1429 = vmatpush.msra.mxu0 %v745_v31  ;;  %1452 = vmatpush.msra.mxu1 %v761_v32  ;;  %v858_v0 = vld [vmem:[%s3893_s30 + $0x3b0] sm:$0xff]  ;;  %v857_v3 = vld [vmem:[%s3893_s30 + $0x3a8] sm:$0xff]  ;;  %v997_v5 = vperm.slane %v3949_v34, 1  ;;  %v856_v8 = vld [vmem:[%s3893_s30 + $0x3a0] sm:$0xff]  ;;  %v998_v31 = vperm.slane %v3954_v41, 1  ;;  %v999_v32 = vperm.slane %v3957_v42, 1 }
  0xb5   : > { %v736_v17 = vmax.f32 %v662_v13, 0.0  ;;  %3581 = vmatmul.msk.f32.vlgmr.msra.gmra.mxu2 %vm400_vm0, %v734_v10  ;;  %3582 = vmatmul.msk.f32.vlgmr.msra.gmra.mxu3 %vm400_vm0, %v735_v12  ;;  %v681_v18 = vpop.f32.mrf.mxu1 }
  0xb6   : > { %v682_v21 = vadd.f32 %v681_v18, %v397_v9  ;;  %1430 = vmatpush.msra.mxu0 %v744_v35  ;;  %1453 = vmatpush.msra.mxu1 %v760_v36 }
  0xb7   : > { %3583 = vmatmul.msk.f32.vlgmr.msrb.gmra.mxu0 %vm400_vm0, %v736_v17  ;;  %1473 = vmatpush.msra.mxu2 %v779_v44  ;;  %v939_v44 = vld [vmem:[%s3893_s30 + $0x638] sm:$0xff] }
  0xb8   : > { %v737_v22 = vmax.f32 %v682_v21, 0.0  ;;  %1519 = vmatpush.msrb.mxu0 %v811_v37  ;;  %1496 = vmatpush.msra.mxu3 %v795_v45  ;;  %v874_v21 = vld [vmem:[%s3893_s30 + $0x430] sm:$0xff] }
  0xb9   : > { %v701_v23 = vpop.f32.mrf.mxu2  ;;  %v721_v24 = vpop.f32.mrf.mxu3  ;;  %1474 = vmatpush.msra.mxu2 %v778_v51 }
  0xba   : > { %v702_v25 = vadd.f32 %v701_v23, %v398_v19  ;;  %v722_v26 = vadd.f32 %v721_v24, %v399_v20  ;;  %3584 = vmatmul.msk.f32.vlgmr.msrb.gmra.mxu1 %vm400_vm0, %v737_v22  ;;  %1520 = vmatpush.msrb.mxu0 %v810_v40  ;;  %v875_v19 = vld [vmem:[%s3893_s30 + $0x438] sm:$0xff]  ;;  %v890_v22 = vld [vmem:[%s3893_s30 + $0x4b0] sm:$0xff]  ;;  %v1000_v23 = vperm.slane %v3964_v49, 1  ;;  %v1001_v24 = vperm.slane %v3967_v50, 1 }
  0xbb   : > { %1542 = vmatpush.msrb.mxu1 %v827_v38  ;;  %1497 = vmatpush.msra.mxu3 %v794_v52  ;;  %v891_v20 = vld [vmem:[%s3893_s30 + $0x4b8] sm:$0xff] }
  0xbc   : > { %v738_v27 = vmax.f32 %v702_v25, 0.0  ;;  %v739_v28 = vmax.f32 %v722_v26, 0.0  ;;  %1521 = vmatpush.msrb.mxu0 %v809_v47  ;;  %1475 = vmatpush.msra.mxu2 %v777_v56  ;;  %v873_v25 = vld [vmem:[%s3893_s30 + $0x428] sm:$0xff]  ;;  %v1004_v56 = vperm.slane %v3990_v11, 1 }
  0xbd   : > { %1543 = vmatpush.msrb.mxu1 %v826_v43  ;;  %1498 = vmatpush.msra.mxu3 %v793_v57  ;;  %v889_v26 = vld [vmem:[%s3893_s30 + $0x4a8] sm:$0xff]  ;;  %v1005_v57 = vperm.slane %v3997_v16, 1 }
  0xbe   : > { %3585 = vmatmul.msk.f32.vlgmr.msrb.gmra.mxu2 %vm400_vm0, %v738_v27  ;;  %3586 = vmatmul.msk.f32.vlgmr.msrb.gmra.mxu3 %vm400_vm0, %v739_v28  ;;  %v872_v27 = vld [vmem:[%s3893_s30 + $0x420] sm:$0xff] }
  0xbf   : > { %1544 = vmatpush.msrb.mxu1 %v825_v48  ;;  %1522 = vmatpush.msrb.mxu0 %v808_v54  ;;  %v888_v28 = vld [vmem:[%s3893_s30 + $0x4a0] sm:$0xff]  ;;  %v955_v48 = vld [vmem:[%s3893_s30 + $0x6b8] sm:$0xff]  ;;  %v938_v54 = vld [vmem:[%s3893_s30 + $0x630] sm:$0xff] }
  0xc0   : > { %1476 = vmatpush.msra.mxu2 %v776_v58  ;;  %1499 = vmatpush.msra.mxu3 %v792_v59  ;;  %v923_v58 = vld [vmem:[%s3893_s30 + $0x5b8] sm:$0xff]  ;;  %v954_v59 = vld [vmem:[%s3893_s30 + $0x6b0] sm:$0xff] }
  0xc1   : > { %1545 = vmatpush.msrb.mxu1 %v824_v55  ;;  %v907_v55 = vld [vmem:[%s3893_s30 + $0x538] sm:$0xff] }
  0xc2   : > { %1565 = vmatpush.msrb.mxu2 %v843_v60  ;;  %1588 = vmatpush.msrb.mxu3 %v859_v61  ;;  %v937_v60 = vld [vmem:[%s3893_s30 + $0x628] sm:$0xff]  ;;  %v906_v61 = vld [vmem:[%s3893_s30 + $0x530] sm:$0xff] }
  0xc4   : > { %1566 = vmatpush.msrb.mxu2 %v842_v62  ;;  %1589 = vmatpush.msrb.mxu3 %v858_v0  ;;  %v922_v62 = vld [vmem:[%s3893_s30 + $0x5b0] sm:$0xff]  ;;  %v953_v0 = vld [vmem:[%s3893_s30 + $0x6a8] sm:$0xff] }
  0xc6   : > { %1567 = vmatpush.msrb.mxu2 %v841_v2  ;;  %1590 = vmatpush.msrb.mxu3 %v857_v3 }
  0xc8   : > { %1568 = vmatpush.msrb.mxu2 %v840_v7  ;;  %1591 = vmatpush.msrb.mxu3 %v856_v8  ;;  %v936_v7 = vld [vmem:[%s3893_s30 + $0x620] sm:$0xff]  ;;  %v905_v8 = vld [vmem:[%s3893_s30 + $0x528] sm:$0xff] }
 0x116   : > { %v1032_v9 = vpop.f32.mrf.mxu0 }
 0x117   : > { %v1055_v10 = vpop.f32.mrf.mxu1  ;;  %v1033_v12 = vadd.f32 %v1032_v9, %v996_v4  ;;  %v1002_v4 = vperm.slane %v3978_v1, 1 }
 0x118   : > { %v1056_v13 = vadd.f32 %v1055_v10, %v997_v5  ;;  %v1003_v5 = vperm.slane %v3983_v6, 1 }
 0x119   : > { %v1380_v17 = vmax.f32 %v1033_v12, 0.0  ;;  %v921_v12 = vld [vmem:[%s3893_s30 + $0x5a8] sm:$0xff] }
 0x11a   : > { %v1381_v18 = vmax.f32 %v1056_v13, 0.0  ;;  %v952_v13 = vld [vmem:[%s3893_s30 + $0x6a0] sm:$0xff] }
 0x11b   : > { %3587 = vmatmul.msk.f32.vlgmr.msra.gmra.mxu0 %vm400_vm0, %v1380_v17 }
 0x11c   : > { %3588 = vmatmul.msk.f32.vlgmr.msra.gmra.mxu1 %vm400_vm0, %v1381_v18  ;;  %1611 = vmatpush.msra.mxu0 %v875_v19 }
 0x11d   : > { %1634 = vmatpush.msra.mxu1 %v891_v20 }
 0x11e   : > { %1612 = vmatpush.msra.mxu0 %v874_v21  ;;  %v904_v21 = vld [vmem:[%s3893_s30 + $0x520] sm:$0xff] }
 0x11f   : > { %1635 = vmatpush.msra.mxu1 %v890_v22  ;;  %v920_v22 = vld [vmem:[%s3893_s30 + $0x5a0] sm:$0xff] }
 0x120   : > { %1613 = vmatpush.msra.mxu0 %v873_v25  ;;  %v751_v25 = vld [vmem:[%s3893_s30 + $0x58] sm:$0xff] }
 0x121   : > { %v1124_v29 = vpop.f32.mrf.mxu0  ;;  %v1147_v30 = vpop.f32.mrf.mxu1  ;;  %1636 = vmatpush.msra.mxu1 %v889_v26  ;;  %v767_v26 = vld [vmem:[%s3893_s30 + $0xd8] sm:$0xff] }
 0x122   : > { %v1125_v35 = vadd.f32 %v1124_v29, %v1000_v23  ;;  %v1148_v36 = vadd.f32 %v1147_v30, %v1001_v24  ;;  %1614 = vmatpush.msra.mxu0 %v872_v27  ;;  %v1008_v29 = vperm.slane %v4026_v53, 1  ;;  %v971_v30 = vld [vmem:[%s3893_s30 + $0x738] sm:$0xff] }
 0x123   : > { %1637 = vmatpush.msra.mxu1 %v888_v28 }
 0x124   : > { %v1384_v37 = vmax.f32 %v1125_v35, 0.0  ;;  %v1385_v38 = vmax.f32 %v1148_v36, 0.0  ;;  %v1078_v40 = vpop.f32.mrf.mxu2  ;;  %v1101_v43 = vpop.f32.mrf.mxu3  ;;  %v986_v35 = vld [vmem:[%s3893_s30 + $0x7b0] sm:$0xff] }
 0x125   : > { %v1079_v45 = vadd.f32 %v1078_v40, %v998_v31  ;;  %v1102_v47 = vadd.f32 %v1101_v43, %v999_v32  ;;  %v987_v31 = vld [vmem:[%s3893_s30 + $0x7b8] sm:$0xff]  ;;  %v970_v32 = vld [vmem:[%s3893_s30 + $0x730] sm:$0xff]  ;;  %v1006_v40 = vperm.slane %v4014_v39, 1  ;;  %v1007_v43 = vperm.slane %v4019_v46, 1 }
 0x126   : > { %3591 = vmatmul.msk.f32.vlgmr.msrb.gmra.mxu0 %vm400_vm0, %v1384_v37  ;;  %3592 = vmatmul.msk.f32.vlgmr.msrb.gmra.mxu1 %vm400_vm0, %v1385_v38  ;;  %v1009_v37 = vperm.slane %v4040_v63, 1 }
 0x127   : > { %v1382_v51 = vmax.f32 %v1079_v45, 0.0  ;;  %v1383_v52 = vmax.f32 %v1102_v47, 0.0  ;;  %1703 = vmatpush.msrb.mxu0 %v939_v44  ;;  %1726 = vmatpush.msrb.mxu1 %v955_v48  ;;  %v969_v44 = vld [vmem:[%s3893_s30 + $0x728] sm:$0xff]  ;;  %v968_v48 = vld [vmem:[%s3893_s30 + $0x720] sm:$0xff] }
 0x128   : > { %v985_v45 = vld [vmem:[%s3893_s30 + $0x7a8] sm:$0xff] }
 0x129   : > { %3589 = vmatmul.msk.f32.vlgmr.msra.gmra.mxu2 %vm400_vm0, %v1382_v51  ;;  %3590 = vmatmul.msk.f32.vlgmr.msra.gmra.mxu3 %vm400_vm0, %v1383_v52  ;;  %v984_v51 = vld [vmem:[%s3893_s30 + $0x7a0] sm:$0xff] }
 0x12a   : > { %1704 = vmatpush.msrb.mxu0 %v938_v54  ;;  %1657 = vmatpush.msra.mxu2 %v907_v55 }
 0x12b   : > { %v1216_v2 = vpop.f32.mrf.mxu0  ;;  %v1239_v3 = vpop.f32.mrf.mxu1  ;;  %1680 = vmatpush.msra.mxu3 %v923_v58  ;;  %1727 = vmatpush.msrb.mxu1 %v954_v59 }
 0x12c   : > { %v1217_v9 = vadd.f32 %v1216_v2, %v1004_v56  ;;  %v1240_v10 = vadd.f32 %v1239_v3, %v1005_v57  ;;  %1705 = vmatpush.msrb.mxu0 %v937_v60  ;;  %1658 = vmatpush.msra.mxu2 %v906_v61 }
 0x12d   : > { %1681 = vmatpush.msra.mxu3 %v922_v62  ;;  %1728 = vmatpush.msrb.mxu1 %v953_v0  ;;  %v1010_v62 = vperm.slane %v4046_v14, 1  ;;  %v1011_v0 = vperm.slane %v4049_v15, 1 }
 0x12e   : > { %v1388_v17 = vmax.f32 %v1217_v9, 0.0  ;;  %v1389_v18 = vmax.f32 %v1240_v10, 0.0  ;;  %v1170_v19 = vpop.f32.mrf.mxu2  ;;  %v1193_v20 = vpop.f32.mrf.mxu3  ;;  %1706 = vmatpush.msrb.mxu0 %v936_v7  ;;  %1659 = vmatpush.msra.mxu2 %v905_v8  ;;  %v750_v9 = vld [vmem:[%s3893_s30 + $0x50] sm:$0xff] }
 0x12f   : > { %v1171_v23 = vadd.f32 %v1170_v19, %v1002_v4  ;;  %v1194_v24 = vadd.f32 %v1193_v20, %v1003_v5  ;;  %1682 = vmatpush.msra.mxu3 %v921_v12  ;;  %1729 = vmatpush.msrb.mxu1 %v952_v13  ;;  %v766_v10 = vld [vmem:[%s3893_s30 + $0xd0] sm:$0xff]  ;;  %v749_v12 = vld [vmem:[%s3893_s30 + $0x48] sm:$0xff]  ;;  %v815_v19 = vld [vmem:[%s3893_s30 + $0x258] sm:$0xff] }
 0x130   : > { %3595 = vmatmul.msk.f32.vlgmr.msra.gmra.mxu0 %vm400_vm0, %v1388_v17  ;;  %3596 = vmatmul.msk.f32.vlgmr.msra.gmra.mxu1 %vm400_vm0, %v1389_v18  ;;  %v765_v13 = vld [vmem:[%s3893_s30 + $0xc8] sm:$0xff]  ;;  %v748_v17 = vld [vmem:[%s3893_s30 + $0x40] sm:$0xff]  ;;  %v831_v20 = vld [vmem:[%s3893_s30 + $0x2d8] sm:$0xff] }
 0x131   : > { %v1386_v27 = vmax.f32 %v1171_v23, 0.0  ;;  %v1387_v28 = vmax.f32 %v1194_v24, 0.0  ;;  %1660 = vmatpush.msra.mxu2 %v904_v21  ;;  %1683 = vmatpush.msra.mxu3 %v920_v22  ;;  %v764_v18 = vld [vmem:[%s3893_s30 + $0xc0] sm:$0xff]  ;;  %v814_v21 = vld [vmem:[%s3893_s30 + $0x250] sm:$0xff]  ;;  %v813_v23 = vld [vmem:[%s3893_s30 + $0x248] sm:$0xff] }
 0x132   : > { %1827 = vmatpush.msra.mxu0 %v751_v25  ;;  %1850 = vmatpush.msra.mxu1 %v767_v26  ;;  %v830_v22 = vld [vmem:[%s3893_s30 + $0x2d0] sm:$0xff]  ;;  %v829_v24 = vld [vmem:[%s3893_s30 + $0x2c8] sm:$0xff]  ;;  %v812_v25 = vld [vmem:[%s3893_s30 + $0x240] sm:$0xff] }
 0x133   : > { %3593 = vmatmul.msk.f32.vlgmr.msrb.gmra.mxu2 %vm400_vm0, %v1386_v27  ;;  %3594 = vmatmul.msk.f32.vlgmr.msrb.gmra.mxu3 %vm400_vm0, %v1387_v28  ;;  %v828_v26 = vld [vmem:[%s3893_s30 + $0x2c0] sm:$0xff]  ;;  %v783_v27 = vld [vmem:[%s3893_s30 + $0x158] sm:$0xff] }
 0x134   : > { %v1308_v36 = vpop.f32.mrf.mxu0  ;;  %1749 = vmatpush.msrb.mxu2 %v971_v30  ;;  %1772 = vmatpush.msrb.mxu3 %v987_v31  ;;  %v799_v28 = vld [vmem:[%s3893_s30 + $0x1d8] sm:$0xff]  ;;  %v798_v30 = vld [vmem:[%s3893_s30 + $0x1d0] sm:$0xff]  ;;  %v781_v31 = vld [vmem:[%s3893_s30 + $0x148] sm:$0xff] }
 0x135   : > { %v1309_v38 = vadd.f32 %v1308_v36, %v1008_v29  ;;  %1828 = vmatpush.msra.mxu0 %v750_v9  ;;  %1851 = vmatpush.msra.mxu1 %v766_v10  ;;  %v782_v29 = vld [vmem:[%s3893_s30 + $0x150] sm:$0xff]  ;;  %v796_v36 = vld [vmem:[%s3893_s30 + $0x1c0] sm:$0xff] }
 0x136   : > { %1750 = vmatpush.msrb.mxu2 %v970_v32  ;;  %1773 = vmatpush.msrb.mxu3 %v986_v35  ;;  %v797_v32 = vld [vmem:[%s3893_s30 + $0x1c8] sm:$0xff]  ;;  %v780_v35 = vld [vmem:[%s3893_s30 + $0x140] sm:$0xff] }
 0x137   : > { %v1392_v47 = vmax.f32 %v1309_v38, 0.0  ;;  %v1331_v52 = vpop.f32.mrf.mxu1  ;;  %1829 = vmatpush.msra.mxu0 %v749_v12  ;;  %1852 = vmatpush.msra.mxu1 %v765_v13  ;;  %v1397_v38 = vperm.slane %v3949_v34, 2  ;;  %v861_v34 = vld [vmem:[%s3893_s30 + $0x3c8] sm:$0xff]  ;;  %v943_v12 = vld [vmem:[%s3893_s30 + $0x658] sm:$0xff]  ;;  %v942_v13 = vld [vmem:[%s3893_s30 + $0x650] sm:$0xff] }
 0x138   : > { %v1262_v54 = vpop.f32.mrf.mxu2  ;;  %v1285_v55 = vpop.f32.mrf.mxu3  ;;  %1751 = vmatpush.msrb.mxu2 %v969_v44  ;;  %1774 = vmatpush.msrb.mxu3 %v985_v45  ;;  %v1332_v56 = vadd.f32 %v1331_v52, %v1009_v37  ;;  %v1396_v37 = vperm.slane %v3946_v33, 2  ;;  %v846_v44 = vld [vmem:[%s3893_s30 + $0x350] sm:$0xff]  ;;  %v845_v33 = vld [vmem:[%s3893_s30 + $0x348] sm:$0xff] }
 0x139   : > { %v1263_v57 = vadd.f32 %v1262_v54, %v1006_v40  ;;  %v1286_v58 = vadd.f32 %v1285_v55, %v1007_v43  ;;  %3599 = vmatmul.msk.f32.vlgmr.msrb.gmra.mxu0 %vm400_vm0, %v1392_v47  ;;  %1853 = vmatpush.msra.mxu1 %v764_v18  ;;  %v847_v40 = vld [vmem:[%s3893_s30 + $0x358] sm:$0xff]  ;;  %v862_v45 = vld [vmem:[%s3893_s30 + $0x3d0] sm:$0xff]  ;;  %v844_v54 = vld [vmem:[%s3893_s30 + $0x340] sm:$0xff]  ;;  %v1399_v18 = vperm.slane %v3957_v42, 2 }
 0x13a   : > { %1752 = vmatpush.msrb.mxu2 %v968_v48  ;;  %1775 = vmatpush.msrb.mxu3 %v984_v51  ;;  %v1393_v59 = vmax.f32 %v1332_v56, 0.0  ;;  %v863_v43 = vld [vmem:[%s3893_s30 + $0x3d8] sm:$0xff]  ;;  %v860_v55 = vld [vmem:[%s3893_s30 + $0x3c0] sm:$0xff] }
 0x13b   : > { %v1390_v60 = vmax.f32 %v1263_v57, 0.0  ;;  %v1391_v61 = vmax.f32 %v1286_v58, 0.0  ;;  %1830 = vmatpush.msra.mxu0 %v748_v17  ;;  %v879_v58 = vld [vmem:[%s3893_s30 + $0x458] sm:$0xff]  ;;  %v1398_v17 = vperm.slane %v3954_v41, 2 }
 0x13c   : > { %3600 = vmatmul.msk.f32.vlgmr.msrb.gmra.mxu1 %vm400_vm0, %v1393_v59  ;;  %v895_v59 = vld [vmem:[%s3893_s30 + $0x4d8] sm:$0xff] }
 0x13d   : > { %3597 = vmatmul.msk.f32.vlgmr.msra.gmra.mxu2 %vm400_vm0, %v1390_v60  ;;  %3598 = vmatmul.msk.f32.vlgmr.msra.gmra.mxu3 %vm400_vm0, %v1391_v61  ;;  %v878_v60 = vld [vmem:[%s3893_s30 + $0x450] sm:$0xff] }
 0x13e   : > { %1919 = vmatpush.msrb.mxu0 %v815_v19  ;;  %1942 = vmatpush.msrb.mxu1 %v831_v20  ;;  %v894_v61 = vld [vmem:[%s3893_s30 + $0x4d0] sm:$0xff]  ;;  %v1404_v19 = vperm.slane %v3990_v11, 2  ;;  %v1405_v20 = vperm.slane %v3997_v16, 2  ;;  %v959_v11 = vld [vmem:[%s3893_s30 + $0x6d8] sm:$0xff] }
 0x13f   : > { %1873 = vmatpush.msra.mxu2 %v783_v27  ;;  %1896 = vmatpush.msra.mxu3 %v799_v28 }
 0x140   : > { %1920 = vmatpush.msrb.mxu0 %v814_v21  ;;  %1943 = vmatpush.msrb.mxu1 %v830_v22  ;;  %v941_v21 = vld [vmem:[%s3893_s30 + $0x648] sm:$0xff] }
 0x141   : > { %v1354_v2 = vpop.f32.mrf.mxu2  ;;  %v1377_v3 = vpop.f32.mrf.mxu3  ;;  %1874 = vmatpush.msra.mxu2 %v782_v29  ;;  %1897 = vmatpush.msra.mxu3 %v798_v30 }
 0x142   : > { %v1355_v4 = vadd.f32 %v1354_v2, %v1010_v62  ;;  %v1378_v5 = vadd.f32 %v1377_v3, %v1011_v0  ;;  %1921 = vmatpush.msrb.mxu0 %v813_v23  ;;  %1944 = vmatpush.msrb.mxu1 %v829_v24  ;;  %v1400_v62 = vperm.slane %v3964_v49, 2  ;;  %v1401_v0 = vperm.slane %v3967_v50, 2  ;;  %v877_v2 = vld [vmem:[%s3893_s30 + $0x448] sm:$0xff]  ;;  %v940_v24 = vld [vmem:[%s3893_s30 + $0x640] sm:$0xff] }
 0x143   : > { %1875 = vmatpush.msra.mxu2 %v781_v31  ;;  %1898 = vmatpush.msra.mxu3 %v797_v32  ;;  %v893_v3 = vld [vmem:[%s3893_s30 + $0x4c8] sm:$0xff]  ;;  %v911_v32 = vld [vmem:[%s3893_s30 + $0x558] sm:$0xff] }
 0x144   : > { %v1394_v7 = vmax.f32 %v1355_v4, 0.0  ;;  %v1395_v8 = vmax.f32 %v1378_v5, 0.0  ;;  %1922 = vmatpush.msrb.mxu0 %v812_v25  ;;  %1945 = vmatpush.msrb.mxu1 %v828_v26  ;;  %v876_v4 = vld [vmem:[%s3893_s30 + $0x440] sm:$0xff] }
 0x145   : > { %1876 = vmatpush.msra.mxu2 %v780_v35  ;;  %1899 = vmatpush.msra.mxu3 %v796_v36  ;;  %v892_v5 = vld [vmem:[%s3893_s30 + $0x4c0] sm:$0xff]  ;;  %v927_v35 = vld [vmem:[%s3893_s30 + $0x5d8] sm:$0xff]  ;;  %v958_v36 = vld [vmem:[%s3893_s30 + $0x6d0] sm:$0xff] }
 0x146   : > { %3601 = vmatmul.msk.f32.vlgmr.msrb.gmra.mxu2 %vm400_vm0, %v1394_v7  ;;  %3602 = vmatmul.msk.f32.vlgmr.msrb.gmra.mxu3 %vm400_vm0, %v1395_v8 }
 0x147   : > { %1965 = vmatpush.msrb.mxu2 %v847_v40  ;;  %1988 = vmatpush.msrb.mxu3 %v863_v43  ;;  %v926_v40 = vld [vmem:[%s3893_s30 + $0x5d0] sm:$0xff]  ;;  %v1408_v43 = vperm.slane %v4026_v53, 2  ;;  %v924_v53 = vld [vmem:[%s3893_s30 + $0x5c0] sm:$0xff] }
 0x149   : > { %1966 = vmatpush.msrb.mxu2 %v846_v44  ;;  %1989 = vmatpush.msrb.mxu3 %v862_v45  ;;  %v1402_v44 = vperm.slane %v3978_v1, 2  ;;  %v957_v45 = vld [vmem:[%s3893_s30 + $0x6c8] sm:$0xff]  ;;  %v1409_v1 = vperm.slane %v4040_v63, 2 }
 0x14b   : > { %1967 = vmatpush.msrb.mxu2 %v845_v33  ;;  %1990 = vmatpush.msrb.mxu3 %v861_v34 }
 0x14d   : > { %1968 = vmatpush.msrb.mxu2 %v844_v54  ;;  %1991 = vmatpush.msrb.mxu3 %v860_v55  ;;  %v908_v54 = vld [vmem:[%s3893_s30 + $0x540] sm:$0xff] }
 0x198   : > { %v1432_v47 = vpop.f32.mrf.mxu0 }
 0x199   : > { %v1455_v48 = vpop.f32.mrf.mxu1  ;;  %v1433_v51 = vadd.f32 %v1432_v47, %v1396_v37  ;;  %v755_v37 = vld [vmem:[%s3893_s30 + $0x78] sm:$0xff]  ;;  %v1403_v47 = vperm.slane %v3983_v6, 2 }
 0x19a   : > { %v1456_v52 = vadd.f32 %v1455_v48, %v1397_v38  ;;  %v910_v38 = vld [vmem:[%s3893_s30 + $0x550] sm:$0xff]  ;;  %v909_v48 = vld [vmem:[%s3893_s30 + $0x548] sm:$0xff] }
 0x19b   : > { %v1780_v56 = vmax.f32 %v1433_v51, 0.0  ;;  %v925_v51 = vld [vmem:[%s3893_s30 + $0x5c8] sm:$0xff] }
 0x19c   : > { %v1781_v57 = vmax.f32 %v1456_v52, 0.0  ;;  %v956_v52 = vld [vmem:[%s3893_s30 + $0x6c0] sm:$0xff] }
 0x19d   : > { %3603 = vmatmul.msk.f32.vlgmr.msra.gmra.mxu0 %vm400_vm0, %v1780_v56 }
 0x19e   : > { %3604 = vmatmul.msk.f32.vlgmr.msra.gmra.mxu1 %vm400_vm0, %v1781_v57  ;;  %2011 = vmatpush.msra.mxu0 %v879_v58  ;;  %v771_v57 = vld [vmem:[%s3893_s30 + $0xf8] sm:$0xff] }
 0x19f   : > { %2034 = vmatpush.msra.mxu1 %v895_v59 }
 0x1a0   : > { %2012 = vmatpush.msra.mxu0 %v878_v60 }
 0x1a1   : > { %2035 = vmatpush.msra.mxu1 %v894_v61  ;;  %v975_v61 = vld [vmem:[%s3893_s30 + $0x758] sm:$0xff] }
 0x1a2   : > { %2013 = vmatpush.msra.mxu0 %v877_v2 }
 0x1a3   : > { %v1524_v7 = vpop.f32.mrf.mxu0  ;;  %v1547_v8 = vpop.f32.mrf.mxu1  ;;  %2036 = vmatpush.msra.mxu1 %v893_v3  ;;  %v974_v3 = vld [vmem:[%s3893_s30 + $0x750] sm:$0xff] }
 0x1a4   : > { %v1525_v9 = vadd.f32 %v1524_v7, %v1400_v62  ;;  %v1548_v10 = vadd.f32 %v1547_v8, %v1401_v0  ;;  %2014 = vmatpush.msra.mxu0 %v876_v4  ;;  %v991_v0 = vld [vmem:[%s3893_s30 + $0x7d8] sm:$0xff]  ;;  %v990_v4 = vld [vmem:[%s3893_s30 + $0x7d0] sm:$0xff]  ;;  %v1406_v7 = vperm.slane %v4014_v39, 2  ;;  %v1407_v8 = vperm.slane %v4019_v46, 2 }
 0x1a5   : > { %2037 = vmatpush.msra.mxu1 %v892_v5 }
 0x1a6   : > { %v1784_v49 = vmax.f32 %v1525_v9, 0.0  ;;  %v1785_v50 = vmax.f32 %v1548_v10, 0.0  ;;  %v973_v9 = vld [vmem:[%s3893_s30 + $0x748] sm:$0xff] }
 0x1a7   : > { %v989_v10 = vld [vmem:[%s3893_s30 + $0x7c8] sm:$0xff] }
 0x1a8   : > { %3607 = vmatmul.msk.f32.vlgmr.msrb.gmra.mxu0 %vm400_vm0, %v1784_v49  ;;  %3608 = vmatmul.msk.f32.vlgmr.msrb.gmra.mxu1 %vm400_vm0, %v1785_v50  ;;  %v972_v49 = vld [vmem:[%s3893_s30 + $0x740] sm:$0xff] }
 0x1a9   : > { %2103 = vmatpush.msrb.mxu0 %v943_v12  ;;  %2126 = vmatpush.msrb.mxu1 %v959_v11  ;;  %v819_v11 = vld [vmem:[%s3893_s30 + $0x278] sm:$0xff] }
 0x1ab   : > { %2104 = vmatpush.msrb.mxu0 %v942_v13  ;;  %2127 = vmatpush.msrb.mxu1 %v958_v36  ;;  %v988_v13 = vld [vmem:[%s3893_s30 + $0x7c0] sm:$0xff] }
 0x1ac   : > { %v1478_v22 = vpop.f32.mrf.mxu2  ;;  %v1501_v23 = vpop.f32.mrf.mxu3  ;;  %v832_v36 = vld [vmem:[%s3893_s30 + $0x2e0] sm:$0xff] }
 0x1ad   : > { %v1616_v25 = vpop.f32.mrf.mxu0  ;;  %v1639_v26 = vpop.f32.mrf.mxu1  ;;  %v1479_v27 = vadd.f32 %v1478_v22, %v1398_v17  ;;  %v1502_v41 = vadd.f32 %v1501_v23, %v1399_v18  ;;  %2105 = vmatpush.msrb.mxu0 %v941_v21  ;;  %2128 = vmatpush.msrb.mxu1 %v957_v45  ;;  %v4273_v45 = vld [vmem:[%s3941_s9 + $0x8] sm:$0x3f] }
 0x1ae   : > { %v1617_v42 = vadd.f32 %v1616_v25, %v1404_v19  ;;  %v1640_v28 = vadd.f32 %v1639_v26, %v1405_v20  ;;  %v1410_v19 = vperm.slane %v4046_v14, 2  ;;  %v1411_v20 = vperm.slane %v4049_v15, 2  ;;  %v753_v14 = vld [vmem:[%s3893_s30 + $0x68] sm:$0xff] }
 0x1af   : > { %v1782_v16 = vmax.f32 %v1479_v27, 0.0  ;;  %v1783_v29 = vmax.f32 %v1502_v41, 0.0  ;;  %2106 = vmatpush.msrb.mxu0 %v940_v24  ;;  %2129 = vmatpush.msrb.mxu1 %v956_v52  ;;  %v754_v27 = vld [vmem:[%s3893_s30 + $0x70] sm:$0xff]  ;;  %v769_v15 = vld [vmem:[%s3893_s30 + $0xe8] sm:$0xff] }
 0x1b0   : > { %v1788_v30 = vmax.f32 %v1617_v42, 0.0  ;;  %v1789_v31 = vmax.f32 %v1640_v28, 0.0  ;;  %v770_v41 = vld [vmem:[%s3893_s30 + $0xf0] sm:$0xff]  ;;  %v752_v42 = vld [vmem:[%s3893_s30 + $0x60] sm:$0xff]  ;;  %v801_v52 = vld [vmem:[%s3893_s30 + $0x1e8] sm:$0xff] }
 0x1b1   : > { %3605 = vmatmul.msk.f32.vlgmr.msra.gmra.mxu2 %vm400_vm0, %v1782_v16  ;;  %3606 = vmatmul.msk.f32.vlgmr.msra.gmra.mxu3 %vm400_vm0, %v1783_v29  ;;  %v768_v28 = vld [vmem:[%s3893_s30 + $0xe0] sm:$0xff]  ;;  %v835_v16 = vld [vmem:[%s3893_s30 + $0x2f8] sm:$0xff]  ;;  %v818_v29 = vld [vmem:[%s3893_s30 + $0x270] sm:$0xff] }
 0x1b2   : > { %3611 = vmatmul.msk.f32.vlgmr.msra.gmra.mxu0 %vm400_vm0, %v1788_v30  ;;  %3612 = vmatmul.msk.f32.vlgmr.msra.gmra.mxu1 %vm400_vm0, %v1789_v31  ;;  %v834_v30 = vld [vmem:[%s3893_s30 + $0x2f0] sm:$0xff]  ;;  %v817_v31 = vld [vmem:[%s3893_s30 + $0x268] sm:$0xff] }
 0x1b3   : > { %2057 = vmatpush.msra.mxu2 %v911_v32  ;;  %2080 = vmatpush.msra.mxu3 %v927_v35  ;;  %v833_v32 = vld [vmem:[%s3893_s30 + $0x2e8] sm:$0xff]  ;;  %v816_v35 = vld [vmem:[%s3893_s30 + $0x260] sm:$0xff] }
 0x1b4   : > { %2227 = vmatpush.msra.mxu0 %v755_v37  ;;  %2250 = vmatpush.msra.mxu1 %v771_v57  ;;  %v787_v37 = vld [vmem:[%s3893_s30 + $0x178] sm:$0xff] }
 0x1b5   : > { %2058 = vmatpush.msra.mxu2 %v910_v38  ;;  %2081 = vmatpush.msra.mxu3 %v926_v40  ;;  %v803_v38 = vld [vmem:[%s3893_s30 + $0x1f8] sm:$0xff]  ;;  %v786_v40 = vld [vmem:[%s3893_s30 + $0x170] sm:$0xff] }
 0x1b6   : > { %v1708_v33 = vpop.f32.mrf.mxu0  ;;  %v1570_v34 = vpop.f32.mrf.mxu2  ;;  %2228 = vmatpush.msra.mxu0 %v754_v27  ;;  %2251 = vmatpush.msra.mxu1 %v770_v41  ;;  %v945_v27 = vld [vmem:[%s3893_s30 + $0x668] sm:$0xff]  ;;  %v944_v41 = vld [vmem:[%s3893_s30 + $0x660] sm:$0xff] }
 0x1b7   : > { %v1709_v55 = vadd.f32 %v1708_v33, %v1408_v43  ;;  %v1571_v56 = vadd.f32 %v1570_v34, %v1402_v44  ;;  %v1593_v6 = vpop.f32.mrf.mxu3  ;;  %2059 = vmatpush.msra.mxu2 %v909_v48  ;;  %2082 = vmatpush.msra.mxu3 %v925_v51  ;;  %v4269_v43 = vld [vmem:[%s3941_s9] sm:$0x3f]  ;;  %v802_v48 = vld [vmem:[%s3893_s30 + $0x1f0] sm:$0xff]  ;;  %v785_v51 = vld [vmem:[%s3893_s30 + $0x168] sm:$0xff] }
 0x1b8   : > { %v1594_v58 = vadd.f32 %v1593_v6, %v1403_v47  ;;  %2229 = vmatpush.msra.mxu0 %v753_v14  ;;  %2252 = vmatpush.msra.mxu1 %v769_v15  ;;  %v1796_v44 = vperm.slane %v4269_v43, 3  ;;  %v1797_v47 = vperm.slane %v4273_v45, 3  ;;  %v867_v6 = vld [vmem:[%s3893_s30 + $0x3f8] sm:$0xff] }
 0x1b9   : > { %v1792_v59 = vmax.f32 %v1709_v55, 0.0  ;;  %v1786_v60 = vmax.f32 %v1571_v56, 0.0  ;;  %2060 = vmatpush.msra.mxu2 %v908_v54  ;;  %2083 = vmatpush.msra.mxu3 %v924_v53  ;;  %v1731_v62 = vpop.f32.mrf.mxu1  ;;  %v784_v54 = vld [vmem:[%s3893_s30 + $0x160] sm:$0xff]  ;;  %v851_v56 = vld [vmem:[%s3893_s30 + $0x378] sm:$0xff] }
 0x1ba   : > { %v1787_v63 = vmax.f32 %v1594_v58, 0.0  ;;  %v1732_v2 = vadd.f32 %v1731_v62, %v1409_v1  ;;  %2230 = vmatpush.msra.mxu0 %v752_v42  ;;  %2253 = vmatpush.msra.mxu1 %v768_v28  ;;  %v800_v53 = vld [vmem:[%s3893_s30 + $0x1e0] sm:$0xff]  ;;  %v898_v62 = vld [vmem:[%s3893_s30 + $0x4f0] sm:$0xff] }
 0x1bb   : > { %3615 = vmatmul.msk.f32.vlgmr.msrb.gmra.mxu0 %vm400_vm0, %v1792_v59  ;;  %3609 = vmatmul.msk.f32.vlgmr.msrb.gmra.mxu2 %vm400_vm0, %v1786_v60  ;;  %v883_v59 = vld [vmem:[%s3893_s30 + $0x478] sm:$0xff] }
 0x1bc   : > { %3610 = vmatmul.msk.f32.vlgmr.msrb.gmra.mxu3 %vm400_vm0, %v1787_v63  ;;  %2149 = vmatpush.msrb.mxu2 %v975_v61  ;;  %v1793_v5 = vmax.f32 %v1732_v2, 0.0  ;;  %v899_v60 = vld [vmem:[%s3893_s30 + $0x4f8] sm:$0xff]  ;;  %v882_v61 = vld [vmem:[%s3893_s30 + $0x470] sm:$0xff]  ;;  %v881_v2 = vld [vmem:[%s3893_s30 + $0x468] sm:$0xff] }
 0x1bd   : > { %2172 = vmatpush.msrb.mxu3 %v991_v0  ;;  %2319 = vmatpush.msrb.mxu0 %v819_v11  ;;  %v850_v63 = vld [vmem:[%s3893_s30 + $0x370] sm:$0xff] }
 0x1be   : > { %2150 = vmatpush.msrb.mxu2 %v974_v3  ;;  %3616 = vmatmul.msk.f32.vlgmr.msrb.gmra.mxu1 %vm400_vm0, %v1793_v5  ;;  %v866_v0 = vld [vmem:[%s3893_s30 + $0x3f0] sm:$0xff]  ;;  %v4293_v3 = vld [vmem:[%s3941_s9 + $0x20] sm:$0x3f]  ;;  %v4297_v5 = vld [vmem:[%s3941_s9 + $0x28] sm:$0x3f] }
 0x1bf   : > { %2173 = vmatpush.msrb.mxu3 %v990_v4  ;;  %2342 = vmatpush.msrb.mxu1 %v835_v16  ;;  %v1800_v4 = vperm.slane %v4293_v3, 3  ;;  %v4322_v11 = vld [vmem:[%s3941_s9 + $0x10] sm:$0x3f] }
 0x1c0   : > { %v1662_v50 = vpop.f32.mrf.mxu2  ;;  %v1685_v12 = vpop.f32.mrf.mxu3  ;;  %2151 = vmatpush.msrb.mxu2 %v973_v9  ;;  %2320 = vmatpush.msrb.mxu0 %v818_v29  ;;  %v849_v9 = vld [vmem:[%s3893_s30 + $0x368] sm:$0xff]  ;;  %v1798_v16 = vperm.slane %v4322_v11, 3  ;;  %v4326_v29 = vld [vmem:[%s3941_s9 + $0x18] sm:$0x3f] }
 0x1c1   : > { %v1663_v17 = vadd.f32 %v1662_v50, %v1406_v7  ;;  %v1686_v18 = vadd.f32 %v1685_v12, %v1407_v8  ;;  %2174 = vmatpush.msrb.mxu3 %v989_v10  ;;  %2343 = vmatpush.msrb.mxu1 %v834_v30  ;;  %v1801_v7 = vperm.slane %v4297_v5, 3  ;;  %v897_v8 = vld [vmem:[%s3893_s30 + $0x4e8] sm:$0xff]  ;;  %v864_v50 = vld [vmem:[%s3893_s30 + $0x3e0] sm:$0xff]  ;;  %v1799_v30 = vperm.slane %v4326_v29, 3 }
 0x1c2   : > { %2152 = vmatpush.msrb.mxu2 %v972_v49  ;;  %2321 = vmatpush.msrb.mxu0 %v817_v31  ;;  %v865_v10 = vld [vmem:[%s3893_s30 + $0x3e8] sm:$0xff]  ;;  %v848_v49 = vld [vmem:[%s3893_s30 + $0x360] sm:$0xff] }
 0x1c3   : > { %v1790_v39 = vmax.f32 %v1663_v17, 0.0  ;;  %v1791_v46 = vmax.f32 %v1686_v18, 0.0  ;;  %2175 = vmatpush.msrb.mxu3 %v988_v13  ;;  %2344 = vmatpush.msrb.mxu1 %v833_v32  ;;  %v880_v12 = vld [vmem:[%s3893_s30 + $0x460] sm:$0xff] }
 0x1c4   : > { %2322 = vmatpush.msrb.mxu0 %v816_v35  ;;  %v896_v13 = vld [vmem:[%s3893_s30 + $0x4e0] sm:$0xff] }
 0x1c5   : > { %3613 = vmatmul.msk.f32.vlgmr.msra.gmra.mxu2 %vm400_vm0, %v1790_v39  ;;  %3614 = vmatmul.msk.f32.vlgmr.msra.gmra.mxu3 %vm400_vm0, %v1791_v46 }
 0x1c6   : > { %2345 = vmatpush.msrb.mxu1 %v832_v36  ;;  %2273 = vmatpush.msra.mxu2 %v787_v37 }
 0x1c7   : > { %2296 = vmatpush.msra.mxu3 %v803_v38 }
 0x1c8   : > { %2274 = vmatpush.msra.mxu2 %v786_v40  ;;  %v4339_v40 = vld [vmem:[%s3941_s9 + $0x60] sm:$0x3f] }
 0x1c9   : > { %v1754_v21 = vpop.f32.mrf.mxu2  ;;  %v1777_v22 = vpop.f32.mrf.mxu3  ;;  %2297 = vmatpush.msra.mxu3 %v802_v48 }
 0x1ca   : > { %v1755_v23 = vadd.f32 %v1754_v21, %v1410_v19  ;;  %v1778_v24 = vadd.f32 %v1777_v22, %v1411_v20  ;;  %2275 = vmatpush.msra.mxu2 %v785_v51  ;;  %v947_v21 = vld [vmem:[%s3893_s30 + $0x678] sm:$0xff]  ;;  %v946_v22 = vld [vmem:[%s3893_s30 + $0x670] sm:$0xff] }
 0x1cb   : > { %2298 = vmatpush.msra.mxu3 %v801_v52  ;;  %v915_v52 = vld [vmem:[%s3893_s30 + $0x578] sm:$0xff] }
 0x1cc   : > { %v1794_v25 = vmax.f32 %v1755_v23, 0.0  ;;  %v1795_v26 = vmax.f32 %v1778_v24, 0.0  ;;  %2276 = vmatpush.msra.mxu2 %v784_v54  ;;  %v4312_v23 = vld [vmem:[%s3941_s9 + $0x40] sm:$0x3f] }
 0x1cd   : > { %2299 = vmatpush.msra.mxu3 %v800_v53  ;;  %v1804_v24 = vperm.slane %v4312_v23, 3  ;;  %v962_v53 = vld [vmem:[%s3893_s30 + $0x6f0] sm:$0xff] }
 0x1ce   : > { %3617 = vmatmul.msk.f32.vlgmr.msrb.gmra.mxu2 %vm400_vm0, %v1794_v25  ;;  %3618 = vmatmul.msk.f32.vlgmr.msrb.gmra.mxu3 %vm400_vm0, %v1795_v26  ;;  %v4316_v25 = vld [vmem:[%s3941_s9 + $0x48] sm:$0x3f] }
 0x1cf   : > { %2365 = vmatpush.msrb.mxu2 %v851_v56  ;;  %2388 = vmatpush.msrb.mxu3 %v867_v6  ;;  %v1805_v26 = vperm.slane %v4316_v25, 3  ;;  %v914_v6 = vld [vmem:[%s3893_s30 + $0x570] sm:$0xff] }
 0x1d1   : > { %2366 = vmatpush.msrb.mxu2 %v850_v63  ;;  %2389 = vmatpush.msrb.mxu3 %v866_v0  ;;  %v929_v63 = vld [vmem:[%s3893_s30 + $0x5e8] sm:$0xff] }
 0x1d3   : > { %2367 = vmatpush.msrb.mxu2 %v849_v9  ;;  %2390 = vmatpush.msrb.mxu3 %v865_v10  ;;  %v912_v9 = vld [vmem:[%s3893_s30 + $0x560] sm:$0xff] }
 0x1d4   : > { %v928_v10 = vld [vmem:[%s3893_s30 + $0x5e0] sm:$0xff] }
 0x1d5   : > { %2368 = vmatpush.msrb.mxu2 %v848_v49  ;;  %2391 = vmatpush.msrb.mxu3 %v864_v50 }
 0x21a   : > { %v1832_v33 = vpop.f32.mrf.mxu0 }
 0x21b   : > { %v1855_v34 = vpop.f32.mrf.mxu1  ;;  %v1833_v1 = vadd.f32 %v1832_v33, %v1796_v44  ;;  %v1808_v44 = vperm.slane %v4339_v40, 3  ;;  %v931_v33 = vld [vmem:[%s3893_s30 + $0x5f8] sm:$0xff] }
 0x21c   : > { %v1856_v55 = vadd.f32 %v1855_v34, %v1797_v47  ;;  %v963_v47 = vld [vmem:[%s3893_s30 + $0x6f8] sm:$0xff] }
 0x21d   : > { %v2180_v57 = vmax.f32 %v1833_v1, 0.0  ;;  %v2599_v34 = vld [vmem:[%s4334_s12 + $0x18] sm:$0xff]  ;;  %v4348_v1 = vld [vmem:[%s3941_s9 + $0x68] sm:$0x3f] }
 0x21e   : > { %v2181_v58 = vmax.f32 %v1856_v55, 0.0  ;;  %v1809_v55 = vperm.slane %v4348_v1, 3 }
 0x21f   : > { %3619 = vmatmul.msk.f32.vlgmr.msra.gmra.mxu0 %vm400_vm0, %v2180_v57  ;;  %v930_v57 = vld [vmem:[%s3893_s30 + $0x5f0] sm:$0xff] }
 0x220   : > { %3620 = vmatmul.msk.f32.vlgmr.msra.gmra.mxu1 %vm400_vm0, %v2181_v58  ;;  %2411 = vmatpush.msra.mxu0 %v883_v59  ;;  %v961_v58 = vld [vmem:[%s3893_s30 + $0x6e8] sm:$0xff] }
 0x221   : > { %2434 = vmatpush.msra.mxu1 %v899_v60  ;;  %v4357_v60 = vld [vmem:[%s3941_s9 + $0x30] sm:$0x3f] }
 0x222   : > { %2412 = vmatpush.msra.mxu0 %v882_v61  ;;  %v1802_v61 = vperm.slane %v4357_v60, 3 }
 0x223   : > { %2435 = vmatpush.msra.mxu1 %v898_v62  ;;  %v913_v62 = vld [vmem:[%s3893_s30 + $0x568] sm:$0xff] }
 0x224   : > { %2413 = vmatpush.msra.mxu0 %v881_v2  ;;  %v4363_v2 = vld [vmem:[%s3941_s9 + $0x38] sm:$0x3f] }
 0x225   : > { %v1924_v17 = vpop.f32.mrf.mxu0  ;;  %v1947_v18 = vpop.f32.mrf.mxu1  ;;  %2436 = vmatpush.msra.mxu1 %v897_v8  ;;  %v960_v8 = vld [vmem:[%s3893_s30 + $0x6e0] sm:$0xff] }
 0x226   : > { %v1925_v39 = vadd.f32 %v1924_v17, %v1800_v4  ;;  %v1948_v46 = vadd.f32 %v1947_v18, %v1801_v7  ;;  %2414 = vmatpush.msra.mxu0 %v880_v12  ;;  %v1803_v4 = vperm.slane %v4363_v2, 3  ;;  %v2603_v17 = vld [vmem:[%s4334_s12 + $0x38] sm:$0xff] }
 0x227   : > { %2437 = vmatpush.msra.mxu1 %v896_v13 }
 0x228   : > { %v2184_v19 = vmax.f32 %v1925_v39, 0.0  ;;  %v2185_v20 = vmax.f32 %v1948_v46, 0.0  ;;  %v979_v46 = vld [vmem:[%s3893_s30 + $0x778] sm:$0xff] }
 0x22a   : > { %3623 = vmatmul.msk.f32.vlgmr.msrb.gmra.mxu0 %vm400_vm0, %v2184_v19  ;;  %3624 = vmatmul.msk.f32.vlgmr.msrb.gmra.mxu1 %vm400_vm0, %v2185_v20  ;;  %v995_v20 = vld [vmem:[%s3893_s30 + $0x7f8] sm:$0xff] }
 0x22b   : > { %2503 = vmatpush.msrb.mxu0 %v947_v21  ;;  %2526 = vmatpush.msrb.mxu1 %v963_v47  ;;  %v978_v21 = vld [vmem:[%s3893_s30 + $0x770] sm:$0xff] }
 0x22d   : > { %2504 = vmatpush.msrb.mxu0 %v946_v22  ;;  %2527 = vmatpush.msrb.mxu1 %v962_v53  ;;  %v994_v22 = vld [vmem:[%s3893_s30 + $0x7f0] sm:$0xff] }
 0x22e   : > { %v2598_v53 = vld [vmem:[%s4334_s12 + $0x10] sm:$0xff] }
 0x22f   : > { %v2016_v14 = vpop.f32.mrf.mxu0  ;;  %v2039_v15 = vpop.f32.mrf.mxu1  ;;  %2505 = vmatpush.msrb.mxu0 %v945_v27  ;;  %2528 = vmatpush.msrb.mxu1 %v961_v58  ;;  %v4383_v27 = vld [vmem:[%s3941_s9 + $0x58] sm:$0x3f]  ;;  %v2600_v58 = vld [vmem:[%s4334_s12 + $0x20] sm:$0xff] }
 0x230   : > { %v2017_v42 = vadd.f32 %v2016_v14, %v1804_v24  ;;  %v2040_v28 = vadd.f32 %v2039_v15, %v1805_v26  ;;  %v4379_v24 = vld [vmem:[%s3941_s9 + $0x50] sm:$0x3f]  ;;  %v977_v14 = vld [vmem:[%s3893_s30 + $0x768] sm:$0xff] }
 0x231   : > { %2506 = vmatpush.msrb.mxu0 %v944_v41  ;;  %2529 = vmatpush.msrb.mxu1 %v960_v8  ;;  %v1806_v26 = vperm.slane %v4379_v24, 3  ;;  %v1807_v41 = vperm.slane %v4383_v27, 3  ;;  %v993_v15 = vld [vmem:[%s3893_s30 + $0x7e8] sm:$0xff]  ;;  %v2616_v8 = vld [vmem:[%s4334_s12 + $0xa0] sm:$0xff] }
 0x232   : > { %v2188_v31 = vmax.f32 %v2017_v42, 0.0  ;;  %v2189_v32 = vmax.f32 %v2040_v28, 0.0  ;;  %v976_v42 = vld [vmem:[%s3893_s30 + $0x760] sm:$0xff] }
 0x234   : > { %3627 = vmatmul.msk.f32.vlgmr.msra.gmra.mxu0 %vm400_vm0, %v2188_v31  ;;  %3628 = vmatmul.msk.f32.vlgmr.msra.gmra.mxu1 %vm400_vm0, %v2189_v32  ;;  %v1878_v35 = vpop.f32.mrf.mxu2  ;;  %v1901_v36 = vpop.f32.mrf.mxu3 }
 0x235   : > { %v1879_v37 = vadd.f32 %v1878_v35, %v1798_v16  ;;  %v1902_v38 = vadd.f32 %v1901_v36, %v1799_v30  ;;  %2691 = vmatpush.msra.mxu0 %v2599_v34  ;;  %2714 = vmatpush.msra.mxu1 %v2603_v17  ;;  %v992_v30 = vld [vmem:[%s3893_s30 + $0x7e0] sm:$0xff] }
 0x237   : > { %v2182_v48 = vmax.f32 %v1879_v37, 0.0  ;;  %v2183_v51 = vmax.f32 %v1902_v38, 0.0  ;;  %v4393_v37 = vld [vmem:[%s3941_s9 + $0x70] sm:$0x3f]  ;;  %2692 = vmatpush.msra.mxu0 %v2598_v53 }
 0x238   : > { %v2108_v54 = vpop.f32.mrf.mxu0  ;;  %v1810_v38 = vperm.slane %v4393_v37, 3 }
 0x239   : > { %v2109_v56 = vadd.f32 %v2108_v54, %v1808_v44  ;;  %3621 = vmatmul.msk.f32.vlgmr.msra.gmra.mxu2 %vm400_vm0, %v2182_v48  ;;  %3622 = vmatmul.msk.f32.vlgmr.msra.gmra.mxu3 %vm400_vm0, %v2183_v51  ;;  %v4397_v44 = vld [vmem:[%s3941_s9 + $0x78] sm:$0x3f] }
 0x23a   : > { %2457 = vmatpush.msra.mxu2 %v915_v52  ;;  %2480 = vmatpush.msra.mxu3 %v931_v33  ;;  %v1811_v47 = vperm.slane %v4397_v44, 3 }
 0x23b   : > { %v2192_v59 = vmax.f32 %v2109_v56, 0.0  ;;  %v2131_v0 = vpop.f32.mrf.mxu1  ;;  %v2597_v56 = vld [vmem:[%s4334_s12 + $0x8] sm:$0xff] }
 0x23c   : > { %2458 = vmatpush.msra.mxu2 %v914_v6  ;;  %2481 = vmatpush.msra.mxu3 %v930_v57  ;;  %v2132_v7 = vadd.f32 %v2131_v0, %v1809_v55  ;;  %v2602_v55 = vld [vmem:[%s4334_s12 + $0x30] sm:$0xff]  ;;  %v2601_v6 = vld [vmem:[%s4334_s12 + $0x28] sm:$0xff]  ;;  %v2596_v57 = vld [vmem:[%s4334_s12] sm:$0xff] }
 0x23d   : > { %3631 = vmatmul.msk.f32.vlgmr.msrb.gmra.mxu0 %vm400_vm0, %v2192_v59  ;;  %2715 = vmatpush.msra.mxu1 %v2602_v55  ;;  %v2615_v59 = vld [vmem:[%s4334_s12 + $0x98] sm:$0xff]  ;;  %v2613_v0 = vld [vmem:[%s4334_s12 + $0x88] sm:$0xff] }
 0x23e   : > { %v1970_v49 = vpop.f32.mrf.mxu2  ;;  %2459 = vmatpush.msra.mxu2 %v913_v62  ;;  %2482 = vmatpush.msra.mxu3 %v929_v63  ;;  %v2193_v50 = vmax.f32 %v2132_v7, 0.0  ;;  %v2614_v62 = vld [vmem:[%s4334_s12 + $0x90] sm:$0xff]  ;;  %v2612_v7 = vld [vmem:[%s4334_s12 + $0x80] sm:$0xff] }
 0x23f   : > { %v1971_v12 = vadd.f32 %v1970_v49, %v1802_v61  ;;  %v1993_v13 = vpop.f32.mrf.mxu3  ;;  %2693 = vmatpush.msra.mxu0 %v2597_v56  ;;  %2716 = vmatpush.msra.mxu1 %v2601_v6  ;;  %v2619_v61 = vld [vmem:[%s4334_s12 + $0xb8] sm:$0xff]  ;;  %v2618_v63 = vld [vmem:[%s4334_s12 + $0xb0] sm:$0xff]  ;;  %v2621_v6 = vld [vmem:[%s4334_s12 + $0xc8] sm:$0xff] }
 0x240   : > { %v1994_v18 = vadd.f32 %v1993_v13, %v1803_v4  ;;  %2460 = vmatpush.msra.mxu2 %v912_v9  ;;  %2483 = vmatpush.msra.mxu3 %v928_v10  ;;  %v2617_v4 = vld [vmem:[%s4334_s12 + $0xa8] sm:$0xff]  ;;  %v2196_v9 = vperm.slane %v4269_v43, 4  ;;  %v2197_v10 = vperm.slane %v4273_v45, 4  ;;  %v2611_v13 = vld [vmem:[%s4334_s12 + $0x78] sm:$0xff] }
 0x241   : > { %v2186_v39 = vmax.f32 %v1971_v12, 0.0  ;;  %3632 = vmatmul.msk.f32.vlgmr.msrb.gmra.mxu1 %vm400_vm0, %v2193_v50  ;;  %2694 = vmatpush.msra.mxu0 %v2596_v57  ;;  %v2607_v12 = vld [vmem:[%s4334_s12 + $0x58] sm:$0xff]  ;;  %v2625_v57 = vld [vmem:[%s4334_s12 + $0xe8] sm:$0xff] }
 0x242   : > { %v2187_v19 = vmax.f32 %v1994_v18, 0.0  ;;  %2717 = vmatpush.msra.mxu1 %v2600_v58  ;;  %v2647_v56 = vld [vmem:[%s4334_s12 + $0x198] sm:$0xff]  ;;  %v2646_v58 = vld [vmem:[%s4334_s12 + $0x190] sm:$0xff] }
 0x243   : > { %3625 = vmatmul.msk.f32.vlgmr.msrb.gmra.mxu2 %vm400_vm0, %v2186_v39  ;;  %2783 = vmatpush.msrb.mxu0 %v2615_v59  ;;  %v2606_v39 = vld [vmem:[%s4334_s12 + $0x50] sm:$0xff]  ;;  %v2620_v59 = vld [vmem:[%s4334_s12 + $0xc0] sm:$0xff] }
 0x244   : > { %3626 = vmatmul.msk.f32.vlgmr.msrb.gmra.mxu3 %vm400_vm0, %v2187_v19  ;;  %2549 = vmatpush.msrb.mxu2 %v979_v46  ;;  %v2610_v46 = vld [vmem:[%s4334_s12 + $0x70] sm:$0xff] }
 0x245   : > { %2572 = vmatpush.msrb.mxu3 %v995_v20  ;;  %2806 = vmatpush.msrb.mxu1 %v2619_v61  ;;  %v2624_v61 = vld [vmem:[%s4334_s12 + $0xe0] sm:$0xff] }
 0x246   : > { %2550 = vmatpush.msrb.mxu2 %v978_v21  ;;  %2784 = vmatpush.msrb.mxu0 %v2614_v62  ;;  %v2631_v21 = vld [vmem:[%s4334_s12 + $0x118] sm:$0xff]  ;;  %v2204_v62 = vperm.slane %v4312_v23, 4 }
 0x247   : > { %2573 = vmatpush.msrb.mxu3 %v994_v22  ;;  %2807 = vmatpush.msrb.mxu1 %v2618_v63  ;;  %v2635_v22 = vld [vmem:[%s4334_s12 + $0x138] sm:$0xff]  ;;  %v2205_v63 = vperm.slane %v4316_v25, 4 }
 0x248   : > { %v2062_v28 = vpop.f32.mrf.mxu2  ;;  %v2085_v16 = vpop.f32.mrf.mxu3  ;;  %2551 = vmatpush.msrb.mxu2 %v977_v14  ;;  %2785 = vmatpush.msrb.mxu0 %v2613_v0  ;;  %v2630_v14 = vld [vmem:[%s4334_s12 + $0x110] sm:$0xff]  ;;  %v2645_v0 = vld [vmem:[%s4334_s12 + $0x188] sm:$0xff] }
 0x249   : > { %v2063_v31 = vadd.f32 %v2062_v28, %v1806_v26  ;;  %v2086_v32 = vadd.f32 %v2085_v16, %v1807_v41  ;;  %2574 = vmatpush.msrb.mxu3 %v993_v15  ;;  %2808 = vmatpush.msrb.mxu1 %v2617_v4  ;;  %v2605_v26 = vld [vmem:[%s4334_s12 + $0x48] sm:$0xff]  ;;  %v2634_v15 = vld [vmem:[%s4334_s12 + $0x130] sm:$0xff]  ;;  %v2608_v28 = vld [vmem:[%s4334_s12 + $0x60] sm:$0xff]  ;;  %v2200_v16 = vperm.slane %v4293_v3, 4 }
 0x24a   : > { %2552 = vmatpush.msrb.mxu2 %v976_v42  ;;  %2786 = vmatpush.msrb.mxu0 %v2612_v7  ;;  %v2609_v41 = vld [vmem:[%s4334_s12 + $0x68] sm:$0xff]  ;;  %v2604_v42 = vld [vmem:[%s4334_s12 + $0x40] sm:$0xff] }
 0x24b   : > { %v2190_v35 = vmax.f32 %v2063_v31, 0.0  ;;  %v2191_v36 = vmax.f32 %v2086_v32, 0.0  ;;  %2575 = vmatpush.msrb.mxu3 %v992_v30  ;;  %2809 = vmatpush.msrb.mxu1 %v2616_v8  ;;  %v2201_v30 = vperm.slane %v4297_v5, 4  ;;  %v2629_v31 = vld [vmem:[%s4334_s12 + $0x108] sm:$0xff]  ;;  %v2644_v4 = vld [vmem:[%s4334_s12 + $0x180] sm:$0xff] }
 0x24c   : > { %v2633_v32 = vld [vmem:[%s4334_s12 + $0x128] sm:$0xff] }
 0x24d   : > { %3629 = vmatmul.msk.f32.vlgmr.msra.gmra.mxu2 %vm400_vm0, %v2190_v35  ;;  %3630 = vmatmul.msk.f32.vlgmr.msra.gmra.mxu3 %vm400_vm0, %v2191_v36  ;;  %v2623_v35 = vld [vmem:[%s4334_s12 + $0xd8] sm:$0xff] }
 0x24e   : > { %2737 = vmatpush.msra.mxu2 %v2607_v12  ;;  %2760 = vmatpush.msra.mxu3 %v2611_v13  ;;  %v2627_v36 = vld [vmem:[%s4334_s12 + $0xf8] sm:$0xff]  ;;  %v2208_v12 = vperm.slane %v4339_v40, 4  ;;  %v2198_v13 = vperm.slane %v4322_v11, 4 }
 0x250   : > { %2738 = vmatpush.msra.mxu2 %v2606_v39  ;;  %2761 = vmatpush.msra.mxu3 %v2610_v46 }
 0x251   : > { %v2154_v48 = vpop.f32.mrf.mxu2  ;;  %v2177_v51 = vpop.f32.mrf.mxu3 }
 0x252   : > { %v2155_v52 = vadd.f32 %v2154_v48, %v1810_v38  ;;  %v2178_v33 = vadd.f32 %v2177_v51, %v1811_v47  ;;  %2739 = vmatpush.msra.mxu2 %v2605_v26  ;;  %2762 = vmatpush.msra.mxu3 %v2609_v41  ;;  %v2628_v38 = vld [vmem:[%s4334_s12 + $0x100] sm:$0xff]  ;;  %v2651_v26 = vld [vmem:[%s4334_s12 + $0x1b8] sm:$0xff]  ;;  %v2209_v41 = vperm.slane %v4348_v1, 4 }
 0x253   : > { %v2632_v47 = vld [vmem:[%s4334_s12 + $0x120] sm:$0xff] }
 0x254   : > { %v2194_v34 = vmax.f32 %v2155_v52, 0.0  ;;  %v2195_v54 = vmax.f32 %v2178_v33, 0.0  ;;  %2740 = vmatpush.msra.mxu2 %v2604_v42  ;;  %2763 = vmatpush.msra.mxu3 %v2608_v28  ;;  %v2639_v28 = vld [vmem:[%s4334_s12 + $0x158] sm:$0xff] }
 0x256   : > { %3633 = vmatmul.msk.f32.vlgmr.msrb.gmra.mxu2 %vm400_vm0, %v2194_v34  ;;  %3634 = vmatmul.msk.f32.vlgmr.msrb.gmra.mxu3 %vm400_vm0, %v2195_v54  ;;  %v2622_v34 = vld [vmem:[%s4334_s12 + $0xd0] sm:$0xff] }
 0x257   : > { %2829 = vmatpush.msrb.mxu2 %v2623_v35  ;;  %2852 = vmatpush.msrb.mxu3 %v2627_v36  ;;  %v2626_v54 = vld [vmem:[%s4334_s12 + $0xf0] sm:$0xff]  ;;  %v2649_v36 = vld [vmem:[%s4334_s12 + $0x1a8] sm:$0xff] }
 0x259   : > { %2830 = vmatpush.msrb.mxu2 %v2622_v34  ;;  %2853 = vmatpush.msrb.mxu3 %v2626_v54  ;;  %v2640_v34 = vld [vmem:[%s4334_s12 + $0x160] sm:$0xff] }
 0x25b   : > { %2831 = vmatpush.msrb.mxu2 %v2621_v6  ;;  %2854 = vmatpush.msrb.mxu3 %v2625_v57 }
 0x25d   : > { %2832 = vmatpush.msrb.mxu2 %v2620_v59  ;;  %2855 = vmatpush.msrb.mxu3 %v2624_v61  ;;  %v2659_v61 = vld [vmem:[%s4334_s12 + $0x1f8] sm:$0xff] }
 0x29c   : > { %v2232_v49 = vpop.f32.mrf.mxu0 }
 0x29d   : > { %v2255_v50 = vpop.f32.mrf.mxu1  ;;  %v2233_v17 = vadd.f32 %v2232_v49, %v2196_v9 }
 0x29e   : > { %v2256_v18 = vadd.f32 %v2255_v50, %v2197_v10 }
 0x29f   : > { %v2580_v19 = vmax.f32 %v2233_v17, 0.0  ;;  %v2199_v17 = vperm.slane %v4326_v29, 4 }
 0x2a0   : > { %v2581_v20 = vmax.f32 %v2256_v18, 0.0 }
 0x2a1   : > { %3635 = vmatmul.msk.f32.vlgmr.msra.gmra.mxu0 %vm400_vm0, %v2580_v19 }
 0x2a2   : > { %3636 = vmatmul.msk.f32.vlgmr.msra.gmra.mxu1 %vm400_vm0, %v2581_v20  ;;  %2875 = vmatpush.msra.mxu0 %v2631_v21 }
 0x2a3   : > { %2898 = vmatpush.msra.mxu1 %v2635_v22 }
 0x2a4   : > { %2876 = vmatpush.msra.mxu0 %v2630_v14 }
 0x2a5   : > { %2899 = vmatpush.msra.mxu1 %v2634_v15 }
 0x2a6   : > { %2877 = vmatpush.msra.mxu0 %v2629_v31  ;;  %v2638_v31 = vld [vmem:[%s4334_s12 + $0x150] sm:$0xff] }
 0x2a7   : > { %v2324_v48 = vpop.f32.mrf.mxu0  ;;  %v2347_v51 = vpop.f32.mrf.mxu1  ;;  %2900 = vmatpush.msra.mxu1 %v2633_v32  ;;  %v2642_v32 = vld [vmem:[%s4334_s12 + $0x170] sm:$0xff] }
 0x2a8   : > { %v2325_v52 = vadd.f32 %v2324_v48, %v2200_v16  ;;  %v2348_v33 = vadd.f32 %v2347_v51, %v2201_v30  ;;  %2878 = vmatpush.msra.mxu0 %v2628_v38  ;;  %v2643_v16 = vld [vmem:[%s4334_s12 + $0x178] sm:$0xff]  ;;  %v2650_v30 = vld [vmem:[%s4334_s12 + $0x1b0] sm:$0xff]  ;;  %v2202_v38 = vperm.slane %v4357_v60, 4  ;;  %v2641_v48 = vld [vmem:[%s4334_s12 + $0x168] sm:$0xff]  ;;  %v2203_v51 = vperm.slane %v4363_v2, 4 }
 0x2a9   : > { %2901 = vmatpush.msra.mxu1 %v2632_v47  ;;  %v2637_v47 = vld [vmem:[%s4334_s12 + $0x148] sm:$0xff] }
 0x2aa   : > { %v2584_v53 = vmax.f32 %v2325_v52, 0.0  ;;  %v2585_v55 = vmax.f32 %v2348_v33, 0.0  ;;  %v2648_v52 = vld [vmem:[%s4334_s12 + $0x1a0] sm:$0xff] }
 0x2ab   : > { %v2636_v33 = vld [vmem:[%s4334_s12 + $0x140] sm:$0xff] }
 0x2ac   : > { %3639 = vmatmul.msk.f32.vlgmr.msrb.gmra.mxu0 %vm400_vm0, %v2584_v53  ;;  %3640 = vmatmul.msk.f32.vlgmr.msrb.gmra.mxu1 %vm400_vm0, %v2585_v55 }
 0x2ad   : > { %2967 = vmatpush.msrb.mxu0 %v2647_v56  ;;  %2990 = vmatpush.msrb.mxu1 %v2651_v26 }
 0x2af   : > { %2968 = vmatpush.msrb.mxu0 %v2646_v58  ;;  %2991 = vmatpush.msrb.mxu1 %v2650_v30  ;;  %v2655_v58 = vld [vmem:[%s4334_s12 + $0x1d8] sm:$0xff] }
 0x2b1   : > { %v2416_v7 = vpop.f32.mrf.mxu0  ;;  %v2439_v8 = vpop.f32.mrf.mxu1  ;;  %2969 = vmatpush.msrb.mxu0 %v2645_v0  ;;  %2992 = vmatpush.msrb.mxu1 %v2649_v36  ;;  %v2206_v0 = vperm.slane %v4379_v24, 4 }
 0x2b2   : > { %v2417_v9 = vadd.f32 %v2416_v7, %v2204_v62  ;;  %v2440_v10 = vadd.f32 %v2439_v8, %v2205_v63  ;;  %v2654_v62 = vld [vmem:[%s4334_s12 + $0x1d0] sm:$0xff]  ;;  %v2653_v7 = vld [vmem:[%s4334_s12 + $0x1c8] sm:$0xff] }
 0x2b3   : > { %2970 = vmatpush.msrb.mxu0 %v2644_v4  ;;  %2993 = vmatpush.msrb.mxu1 %v2648_v52  ;;  %v2658_v63 = vld [vmem:[%s4334_s12 + $0x1f0] sm:$0xff]  ;;  %v2207_v4 = vperm.slane %v4383_v27, 4  ;;  %v2657_v8 = vld [vmem:[%s4334_s12 + $0x1e8] sm:$0xff] }
 0x2b4   : > { %v2588_v49 = vmax.f32 %v2417_v9, 0.0  ;;  %v2589_v50 = vmax.f32 %v2440_v10, 0.0  ;;  %v2652_v9 = vld [vmem:[%s4334_s12 + $0x1c0] sm:$0xff] }
 0x2b6   : > { %3643 = vmatmul.msk.f32.vlgmr.msra.gmra.mxu0 %vm400_vm0, %v2588_v49  ;;  %3644 = vmatmul.msk.f32.vlgmr.msra.gmra.mxu1 %vm400_vm0, %v2589_v50  ;;  %v2656_v50 = vld [vmem:[%s4334_s12 + $0x1e0] sm:$0xff] }
 0x2ba   : > { %v2508_v18 = vpop.f32.mrf.mxu0 }
 0x2bb   : > { %v2509_v39 = vadd.f32 %v2508_v18, %v2208_v12 }
 0x2bc   : > { %v2278_v46 = vpop.f32.mrf.mxu2  ;;  %v2301_v19 = vpop.f32.mrf.mxu3 }
 0x2bd   : > { %v2592_v20 = vmax.f32 %v2509_v39, 0.0  ;;  %v2279_v21 = vadd.f32 %v2278_v46, %v2198_v13  ;;  %v2302_v22 = vadd.f32 %v2301_v19, %v2199_v17  ;;  %v2210_v39 = vperm.slane %v4393_v37, 4 }
 0x2be   : > { %v2531_v14 = vpop.f32.mrf.mxu1  ;;  %v2211_v46 = vperm.slane %v4397_v44, 4 }
 0x2bf   : > { %3647 = vmatmul.msk.f32.vlgmr.msrb.gmra.mxu0 %vm400_vm0, %v2592_v20  ;;  %v2582_v15 = vmax.f32 %v2279_v21, 0.0  ;;  %v2583_v42 = vmax.f32 %v2302_v22, 0.0  ;;  %v2532_v35 = vadd.f32 %v2531_v14, %v2209_v41  ;;  %v2660_v14 = vperm.slane %v4269_v43, 5 }
 0x2c1   : > { %3637 = vmatmul.msk.f32.vlgmr.msra.gmra.mxu2 %vm400_vm0, %v2582_v15  ;;  %3638 = vmatmul.msk.f32.vlgmr.msra.gmra.mxu3 %vm400_vm0, %v2583_v42  ;;  %v2593_v54 = vmax.f32 %v2532_v35, 0.0 }
 0x2c2   : > { %2921 = vmatpush.msra.mxu2 %v2639_v28  ;;  %2944 = vmatpush.msra.mxu3 %v2643_v16  ;;  %v2661_v16 = vperm.slane %v4273_v45, 5 }
 0x2c3   : > { %3648 = vmatmul.msk.f32.vlgmr.msrb.gmra.mxu1 %vm400_vm0, %v2593_v54 }
 0x2c4   : > { %2922 = vmatpush.msra.mxu2 %v2638_v31  ;;  %2945 = vmatpush.msra.mxu3 %v2642_v32  ;;  %v2664_v32 = vperm.slane %v4293_v3, 5  ;;  %v2668_v3 = vperm.slane %v4312_v23, 5 }
 0x2c6   : > { %v2370_v53 = vpop.f32.mrf.mxu2  ;;  %2923 = vmatpush.msra.mxu2 %v2637_v47  ;;  %2946 = vmatpush.msra.mxu3 %v2641_v48  ;;  %v2665_v47 = vperm.slane %v4297_v5, 5 }
 0x2c7   : > { %v2371_v55 = vadd.f32 %v2370_v53, %v2202_v38  ;;  %v2393_v56 = vpop.f32.mrf.mxu3 }
 0x2c8   : > { %v2394_v6 = vadd.f32 %v2393_v56, %v2203_v51  ;;  %2924 = vmatpush.msra.mxu2 %v2636_v33  ;;  %2947 = vmatpush.msra.mxu3 %v2640_v34  ;;  %v2669_v51 = vperm.slane %v4316_v25, 5 }
 0x2c9   : > { %v2586_v57 = vmax.f32 %v2371_v55, 0.0  ;;  %v2672_v55 = vperm.slane %v4339_v40, 5 }
 0x2ca   : > { %v2587_v59 = vmax.f32 %v2394_v6, 0.0 }
 0x2cb   : > { %3641 = vmatmul.msk.f32.vlgmr.msrb.gmra.mxu2 %vm400_vm0, %v2586_v57  ;;  %v2662_v57 = vperm.slane %v4322_v11, 5 }
 0x2cc   : > { %3642 = vmatmul.msk.f32.vlgmr.msrb.gmra.mxu3 %vm400_vm0, %v2587_v59  ;;  %3013 = vmatpush.msrb.mxu2 %v2655_v58 }
 0x2cd   : > { %3036 = vmatpush.msrb.mxu3 %v2659_v61  ;;  %v2663_v61 = vperm.slane %v4326_v29, 5 }
 0x2ce   : > { %3014 = vmatpush.msrb.mxu2 %v2654_v62 }
 0x2cf   : > { %3037 = vmatpush.msrb.mxu3 %v2658_v63 }
 0x2d0   : > { %v2462_v10 = vpop.f32.mrf.mxu2  ;;  %v2485_v49 = vpop.f32.mrf.mxu3  ;;  %3015 = vmatpush.msrb.mxu2 %v2653_v7 }
 0x2d1   : > { %v2463_v12 = vadd.f32 %v2462_v10, %v2206_v0  ;;  %v2486_v13 = vadd.f32 %v2485_v49, %v2207_v4  ;;  %3038 = vmatpush.msrb.mxu3 %v2657_v8  ;;  %v2666_v0 = vperm.slane %v4357_v60, 5  ;;  %v2667_v4 = vperm.slane %v4363_v2, 5 }
 0x2d2   : > { %3016 = vmatpush.msrb.mxu2 %v2652_v9  ;;  %v2670_v49 = vperm.slane %v4379_v24, 5  ;;  %v2671_v60 = vperm.slane %v4383_v27, 5  ;;  %v2673_v24 = vperm.slane %v4348_v1, 5  ;;  %v2674_v27 = vperm.slane %v4393_v37, 5 }
 0x2d3   : > { %v2590_v17 = vmax.f32 %v2463_v12, 0.0  ;;  %v2591_v18 = vmax.f32 %v2486_v13, 0.0  ;;  %3039 = vmatpush.msrb.mxu3 %v2656_v50 }
 0x2d5   : > { %3645 = vmatmul.msk.f32.vlgmr.msra.gmra.mxu2 %vm400_vm0, %v2590_v17  ;;  %3646 = vmatmul.msk.f32.vlgmr.msra.gmra.mxu3 %vm400_vm0, %v2591_v18 }
 0x2d9   : > { %v2554_v19 = vpop.f32.mrf.mxu2  ;;  %v2577_v20 = vpop.f32.mrf.mxu3 }
 0x2da   : > { %v2555_v21 = vadd.f32 %v2554_v19, %v2210_v39  ;;  %v2578_v22 = vadd.f32 %v2577_v20, %v2211_v46  ;;  %v2675_v46 = vperm.slane %v4397_v44, 5 }
 0x2dc   : > { %v2594_v26 = vmax.f32 %v2555_v21, 0.0  ;;  %v2595_v41 = vmax.f32 %v2578_v22, 0.0 }
 0x2de   : > { %3649 = vmatmul.msk.f32.vlgmr.msrb.gmra.mxu2 %vm400_vm0, %v2594_v26  ;;  %3650 = vmatmul.msk.f32.vlgmr.msrb.gmra.mxu3 %vm400_vm0, %v2595_v41 }
 0x31e   : > { %v2696_v15 = vpop.f32.mrf.mxu0 }
 0x31f   : > { %v2719_v42 = vpop.f32.mrf.mxu1  ;;  %v4497_v28 = vadd.f32 %v2696_v15, %v2660_v14 }
 0x320   : > { %v4502_v31 = vadd.f32 %v2719_v42, %v2661_v16 }
 0x321   : > { %v3045_v30 = vsel %vm3044_vm1, %v4497_v28, -inf }
 0x322   : > { %3046 = vmax.xlane.f32.xlu0 %v3045_v30  ;;  %v3048_v35 = vsel %vm3044_vm1, %v4502_v31, -inf }
 0x329   : > { %v2788_v36 = vpop.f32.mrf.mxu0  ;;  %v2811_v43 = vpop.f32.mrf.mxu1 }
 0x32a   : > { %v4507_v38 = vadd.f32 %v2788_v36, %v2664_v32  ;;  %3049 = vmax.xlane.f32.xlu0 %v3048_v35  ;;  %v4512_v48 = vadd.f32 %v2811_v43, %v2665_v47 }
 0x32c   : > { %v3057_v45 = vsel %vm3044_vm1, %v4507_v38, -inf  ;;  %v3060_v52 = vsel %vm3044_vm1, %v4512_v48, -inf }
 0x32d   : > { %3058 = vmax.xlane.f32.xlu2 %v3057_v45 }
 0x333   : > { %v2880_v33 = vpop.f32.mrf.mxu0  ;;  %v2903_v34 = vpop.f32.mrf.mxu1 }
 0x334   : > { %v4518_v54 = vadd.f32 %v2903_v34, %v2669_v51  ;;  %v4520_v5 = vadd.f32 %v2880_v33, %v2668_v3 }
 0x335   : > { %3061 = vmax.xlane.f32.xlu2 %v3060_v52 }
 0x336   : > { %v3072_v53 = vsel %vm3044_vm1, %v4518_v54, -inf  ;;  %v3069_v25 = vsel %vm3044_vm1, %v4520_v5, -inf }
 0x337   : > { %3073 = vmax.xlane.f32.xlu0 %v3072_v53 }
 0x33c   : > { %v2972_v23 = vpop.f32.mrf.mxu0 }
 0x33d   : > { %v4527_v56 = vadd.f32 %v2972_v23, %v2672_v55  ;;  %3070 = vmax.xlane.f32.xlu2 %v3069_v25 }
 0x33f   : > { %v3081_v6 = vsel %vm3044_vm1, %v4527_v56, -inf }
 0x340   : > { %3082 = vmax.xlane.f32.xlu0 %v3081_v6  ;;  %v2995_v19 = vpop.f32.mrf.mxu1 }
 0x341   : > { %v4564_v22 = vadd.f32 %v2995_v19, %v2673_v24 }
 0x343   : > { %v3084_v37 = vsel %vm3044_vm1, %v4564_v22, -inf }
 0x344   : > { %v2742_v58 = vpop.f32.mrf.mxu2  ;;  %v2765_v62 = vpop.f32.mrf.mxu3 }
 0x345   : > { %v4532_v59 = vadd.f32 %v2742_v58, %v2662_v57  ;;  %v4537_v63 = vadd.f32 %v2765_v62, %v2663_v61 }
 0x347   : > { %v3051_v40 = vsel %vm3044_vm1, %v4532_v59, -inf  ;;  %v3054_v7 = vsel %vm3044_vm1, %v4537_v63, -inf }
 0x348   : > { %3052 = vmax.xlane.f32.xlu1 %v3051_v40 }
 0x34e   : > { %v2834_v11 = vpop.f32.mrf.mxu2 }
 0x34f   : > { %v4543_v8 = vadd.f32 %v2834_v11, %v2666_v0  ;;  %v2857_v9 = vpop.f32.mrf.mxu3 }
 0x350   : > { %3055 = vmax.xlane.f32.xlu1 %v3054_v7  ;;  %v4545_v29 = vadd.f32 %v2857_v9, %v2667_v4 }
 0x351   : > { %v3063_v10 = vsel %vm3044_vm1, %v4543_v8, -inf }
 0x352   : > { %3064 = vmax.xlane.f32.xlu0 %v3063_v10  ;;  %v3066_v2 = vsel %vm3044_vm1, %v4545_v29, -inf }
 0x358   : > { %v2926_v50 = vpop.f32.mrf.mxu2  ;;  %v2949_v12 = vpop.f32.mrf.mxu3  ;;  %3067 = vmax.xlane.f32.xlu1 %v3066_v2 }
 0x359   : > { %v4553_v13 = vadd.f32 %v2926_v50, %v2670_v49  ;;  %v4555_v17 = vadd.f32 %v2949_v12, %v2671_v60 }
 0x35b   : > { %v3078_v18 = vsel %vm3044_vm1, %v4555_v17, -inf  ;;  %v3075_v39 = vsel %vm3044_vm1, %v4553_v13, -inf }
 0x35c   : > { %3079 = vmax.xlane.f32.xlu2 %v3078_v18 }
 0x360   : > { %3076 = vmax.xlane.f32.xlu1 %v3075_v39 }
 0x361   : > { %v3018_v20 = vpop.f32.mrf.mxu2  ;;  %v3041_v21 = vpop.f32.mrf.mxu3 }
 0x362   : > { %v4566_v26 = vadd.f32 %v3018_v20, %v2674_v27  ;;  %v4568_v41 = vadd.f32 %v3041_v21, %v2675_v46 }
 0x364   : > { %v3087_v14 = vsel %vm3044_vm1, %v4566_v26, -inf  ;;  %v3090_v1 = vsel %vm3044_vm1, %v4568_v41, -inf }
 0x365   : > { %3088 = vmax.xlane.f32.xlu2 %v3087_v14  ;;  %3091 = vmax.xlane.f32.xlu0 %v3090_v1 }
 0x368   : > { %3085 = vmax.xlane.f32.xlu1 %v3084_v37 }
 0x395   : > { %v3047_v44 = vpop.xlane.xlu0 %3046 }
 0x396   : > { %v3093_v15 = vsub.f32 %v4497_v28, %v3047_v44 }
 0x398   : > { %v3109_v42 = vmul.f32 1.442695, %v3093_v15 }
 0x39a   : > { %3664 = vpow2.f32 %v3109_v42 }
 0x39d   : > { %v3050_v16 = vpop.xlane.xlu0 %3049 }
 0x39e   : > { %v3094_v30 = vsub.f32 %v4502_v31, %v3050_v16 }
 0x3a0   : > { %v3059_v32 = vpop.xlane.xlu2 %3058  ;;  %v4578_v35 = vpop.eup %3664  ;;  %v3111_v43 = vmul.f32 1.442695, %v3094_v30 }
 0x3a1   : > { %v3097_v36 = vsub.f32 %v4507_v38, %v3059_v32  ;;  %v3141_v47 = vsel %vm3044_vm1, %v4578_v35, 0.0 }
 0x3a2   : > { %3666 = vpow2.f32 %v3111_v43  ;;  %3142 = vadd.xlane.f32.xlu1 %v3141_v47 }
 0x3a3   : > { %v3117_v45 = vmul.f32 1.442695, %v3097_v36 }
 0x3a5   : > { %3668 = vpow2.f32 %v3117_v45 }
 0x3a8   : > { %v3062_v51 = vpop.xlane.xlu2 %3061  ;;  %v4583_v3 = vpop.eup %3666 }
 0x3a9   : > { %v3098_v28 = vsub.f32 %v4512_v48, %v3062_v51  ;;  %v3144_v31 = vsel %vm3044_vm1, %v4583_v3, 0.0 }
 0x3aa   : > { %v3074_v52 = vpop.xlane.xlu0 %3073  ;;  %3145 = vadd.xlane.f32.xlu2 %v3144_v31 }
 0x3ab   : > { %v3119_v33 = vmul.f32 1.442695, %v3098_v28  ;;  %v3102_v38 = vsub.f32 %v4518_v54, %v3074_v52  ;;  %v4589_v53 = vpop.eup %3668 }
 0x3ac   : > { %v3153_v23 = vsel %vm3044_vm1, %v4589_v53, 0.0 }
 0x3ad   : > { %3670 = vpow2.f32 %v3119_v33  ;;  %v3127_v34 = vmul.f32 1.442695, %v3102_v38 }
 0x3af   : > { %3672 = vpow2.f32 %v3127_v34 }
 0x3b0   : > { %v3071_v55 = vpop.xlane.xlu2 %3070 }
 0x3b1   : > { %v3101_v25 = vsub.f32 %v4520_v5, %v3071_v55 }
 0x3b2   : > { %3154 = vadd.xlane.f32.xlu2 %v3153_v23 }
 0x3b3   : > { %v4594_v48 = vpop.eup %3670  ;;  %v3125_v6 = vmul.f32 1.442695, %v3101_v25  ;;  %v3083_v57 = vpop.xlane.xlu0 %3082 }
 0x3b4   : > { %v3105_v58 = vsub.f32 %v4527_v56, %v3083_v57  ;;  %v3156_v54 = vsel %vm3044_vm1, %v4594_v48, 0.0 }
 0x3b5   : > { %v4599_v61 = vpop.eup %3672  ;;  %3674 = vpow2.f32 %v3125_v6  ;;  %3157 = vadd.xlane.f32.xlu0 %v3156_v54 }
 0x3b6   : > { %v3133_v62 = vmul.f32 1.442695, %v3105_v58  ;;  %v3168_v5 = vsel %vm3044_vm1, %v4599_v61, 0.0 }
 0x3b7   : > { %3169 = vadd.xlane.f32.xlu1 %v3168_v5 }
 0x3b8   : > { %3676 = vpow2.f32 %v3133_v62 }
 0x3bb   : > { %v4603_v40 = vpop.eup %3674  ;;  %v3053_v0 = vpop.xlane.xlu1 %3052 }
 0x3bc   : > { %v3095_v4 = vsub.f32 %v4532_v59, %v3053_v0  ;;  %v3165_v56 = vsel %vm3044_vm1, %v4603_v40, 0.0 }
 0x3bd   : > { %3166 = vadd.xlane.f32.xlu0 %v3165_v56 }
 0x3be   : > { %v4608_v7 = vpop.eup %3676  ;;  %v3113_v11 = vmul.f32 1.442695, %v3095_v4 }
 0x3bf   : > { %v3177_v9 = vsel %vm3044_vm1, %v4608_v7, 0.0 }
 0x3c0   : > { %3678 = vpow2.f32 %v3113_v11  ;;  %3178 = vadd.xlane.f32.xlu1 %v3177_v9 }
 0x3c3   : > { %v3056_v10 = vpop.xlane.xlu1 %3055 }
 0x3c4   : > { %v3096_v49 = vsub.f32 %v4537_v63, %v3056_v10 }
 0x3c5   : > { %v3065_v60 = vpop.xlane.xlu0 %3064 }
 0x3c6   : > { %v4613_v2 = vpop.eup %3678  ;;  %v3115_v50 = vmul.f32 1.442695, %v3096_v49  ;;  %v3099_v59 = vsub.f32 %v4543_v8, %v3065_v60 }
 0x3c7   : > { %v3147_v12 = vsel %vm3044_vm1, %v4613_v2, 0.0 }
 0x3c8   : > { %3680 = vpow2.f32 %v3115_v50  ;;  %3148 = vadd.xlane.f32.xlu0 %v3147_v12  ;;  %v3121_v18 = vmul.f32 1.442695, %v3099_v59 }
 0x3ca   : > { %3682 = vpow2.f32 %v3121_v18 }
 0x3cb   : > { %v3068_v39 = vpop.xlane.xlu1 %3067 }
 0x3cc   : > { %v3100_v24 = vsub.f32 %v4545_v29, %v3068_v39 }
 0x3ce   : > { %v4619_v27 = vpop.eup %3680  ;;  %v3123_v46 = vmul.f32 1.442695, %v3100_v24 }
 0x3cf   : > { %v3080_v63 = vpop.xlane.xlu2 %3079  ;;  %v3150_v19 = vsel %vm3044_vm1, %v4619_v27, 0.0 }
 0x3d0   : > { %3684 = vpow2.f32 %v3123_v46  ;;  %v3104_v8 = vsub.f32 %v4555_v17, %v3080_v63  ;;  %3151 = vadd.xlane.f32.xlu1 %v3150_v19  ;;  %v4624_v14 = vpop.eup %3682 }
 0x3d1   : > { %v3159_v15 = vsel %vm3044_vm1, %v4624_v14, 0.0 }
 0x3d2   : > { %v3131_v20 = vmul.f32 1.442695, %v3104_v8 }
 0x3d3   : > { %v3077_v21 = vpop.xlane.xlu1 %3076 }
 0x3d4   : > { %3686 = vpow2.f32 %v3131_v20  ;;  %v3103_v1 = vsub.f32 %v4553_v13, %v3077_v21 }
 0x3d6   : > { %v4627_v29 = vpop.eup %3684  ;;  %v3129_v37 = vmul.f32 1.442695, %v3103_v1 }
 0x3d7   : > { %v3162_v44 = vsel %vm3044_vm1, %v4627_v29, 0.0 }
 0x3d8   : > { %3688 = vpow2.f32 %v3129_v37  ;;  %v3089_v42 = vpop.xlane.xlu2 %3088  ;;  %v3092_v17 = vpop.xlane.xlu0 %3091  ;;  %3163 = vadd.xlane.f32.xlu2 %v3162_v44  ;;  %3160 = vadd.xlane.f32.xlu1 %v3159_v15 }
 0x3d9   : > { %v3107_v16 = vsub.f32 %v4566_v26, %v3089_v42  ;;  %v3108_v30 = vsub.f32 %v4568_v41, %v3092_v17 }
 0x3da   : > { %v4635_v32 = vpop.eup %3686 }
 0x3db   : > { %v3137_v13 = vmul.f32 1.442695, %v3107_v16  ;;  %v3139_v36 = vmul.f32 1.442695, %v3108_v30  ;;  %v3174_v43 = vsel %vm3044_vm1, %v4635_v32, 0.0  ;;  %v3086_v47 = vpop.xlane.xlu1 %3085 }
 0x3dc   : > { %3175 = vadd.xlane.f32.xlu0 %v3174_v43  ;;  %v3106_v45 = vsub.f32 %v4564_v22, %v3086_v47 }
 0x3dd   : > { %3690 = vpow2.f32 %v3137_v13 }
 0x3de   : > { %v4640_v51 = vpop.eup %3688  ;;  %3692 = vpow2.f32 %v3139_v36  ;;  %v3135_v28 = vmul.f32 1.442695, %v3106_v45 }
 0x3df   : > { %v3171_v26 = vsel %vm3044_vm1, %v4640_v51, 0.0 }
 0x3e0   : > { %3694 = vpow2.f32 %v3135_v28  ;;  %3172 = vadd.xlane.f32.xlu2 %v3171_v26 }
 0x3e3   : > { %v4644_v41 = vpop.eup %3690 }
 0x3e4   : > { %v4646_v52 = vpop.eup %3692  ;;  %v3183_v31 = vsel %vm3044_vm1, %v4644_v41, 0.0 }
 0x3e5   : > { %3184 = vadd.xlane.f32.xlu0 %v3183_v31  ;;  %v3186_v22 = vsel %vm3044_vm1, %v4646_v52, 0.0 }
 0x3e6   : > { %v4652_v33 = vpop.eup %3694  ;;  %3187 = vadd.xlane.f32.xlu1 %v3186_v22 }
 0x3e7   : > { %v3180_v38 = vsel %vm3044_vm1, %v4652_v33, 0.0 }
 0x3e8   : > { %3181 = vadd.xlane.f32.xlu2 %v3180_v38 }
 0x415   : > { %v3143_v34 = vpop.xlane.xlu1 %3142 }
 0x416   : > { %3696 = vrcp.f32 %v3143_v34  ;;  %v3200_v57 = vand.u32 2147483648, %v3143_v34  ;;  %v3198_v54 = vand.u32 2147483647, %v3143_v34  ;;  %vm3194_vm3 = vweird.f32 %v3143_v34 }
 0x418   : > { %v3201_v0 = vor.u32 1.1754944e-38, %v3200_v57  ;;  %vm3199_vm5 = vcmp.eq.f32.partialorder %v3198_v54, 8.507059e+37 }
 0x41c   : > { %v3697_v55 = vpop.eup %3696 }
 0x41d   : > { %v3190_v25 = vmul.f32 %v3697_v55, %v3143_v34  ;;  %v3146_v23 = vpop.xlane.xlu2 %3145  ;;  %vm3195_vm2 = vweird.f32 %v3697_v55 }
 0x41e   : > { %3698 = vrcp.f32 %v3146_v23  ;;  %vm3196_vm4 = vmor %vm3194_vm3, %vm3195_vm2  ;;  %v3215_v50 = vand.u32 2147483648, %v3146_v23  ;;  %v3213_v12 = vand.u32 2147483647, %v3146_v23  ;;  %vm3209_vm7 = vweird.f32 %v3146_v23 }
 0x41f   : > { %v3191_v6 = vsub.f32 1.0, %v3190_v25 }
 0x420   : > { %v3216_v46 = vor.u32 1.1754944e-38, %v3215_v50  ;;  %vm3214_vm9 = vcmp.eq.f32.partialorder %v3213_v12, 8.507059e+37 }
 0x421   : > { %v3192_v58 = vmul.f32 %v3697_v55, %v3191_v6 }
 0x423   : > { %v3193_v62 = vadd.f32 %v3697_v55, %v3192_v58 }
 0x424   : > { %v3699_v5 = vpop.eup %3698 }
 0x425   : > { %v3197_v4 = vsel %vm3196_vm4, %v3697_v55, %v3193_v62  ;;  %v3205_v56 = vmul.f32 %v3699_v5, %v3146_v23  ;;  %v3155_v11 = vpop.xlane.xlu2 %3154  ;;  %vm3210_vm6 = vweird.f32 %v3699_v5 }
 0x426   : > { %v3202_v9 = vsel %vm3199_vm5, %v3201_v0, %v3197_v4  ;;  %3700 = vrcp.f32 %v3155_v11  ;;  %vm3211_vm8 = vmor %vm3209_vm7, %vm3210_vm6  ;;  %v3258_v20 = vand.u32 2147483647, %v3155_v11  ;;  %vm3254_vm10 = vweird.f32 %v3155_v11 }
 0x427   : > { %v3203_v10 = vmul.f32 %v4578_v35, %v3202_v9  ;;  %v3206_v49 = vsub.f32 1.0, %v3205_v56  ;;  %v3260_v42 = vand.u32 2147483648, %v3155_v11 }
 0x428   : > { %v3158_v60 = vpop.xlane.xlu0 %3157  ;;  %vm4671_vm12 = vcmp.eq.f32.partialorder %v3258_v20, 8.507059e+37 }
 0x429   : > { %3702 = vrcp.f32 %v3158_v60  ;;  %3429 = vst.msk [vmem:[%s4660_s16] sm:$0x3] %vm3044_vm1, %v3203_v10  ;;  %v3207_v59 = vmul.f32 %v3699_v5, %v3206_v49  ;;  %v3275_v36 = vand.u32 2147483648, %v3158_v60  ;;  %v3261_v26 = vor.u32 1.1754944e-38, %v3260_v42 }
 0x42a   : > { %v3170_v18 = vpop.xlane.xlu1 %3169  ;;  %vm3269_vm15 = vweird.f32 %v3158_v60 }
 0x42b   : > { %3704 = vrcp.f32 %v3170_v18  ;;  %v3208_v39 = vadd.f32 %v3699_v5, %v3207_v59  ;;  %v3333_v31 = vand.u32 2147483647, %v3170_v18  ;;  %v3335_v22 = vand.u32 2147483648, %v3170_v18 }
 0x42c   : > { %v3701_v24 = vpop.eup %3700  ;;  %vm3329_vm2 = vweird.f32 %v3170_v18  ;;  %v3276_v6 = vor.u32 1.1754944e-38, %v3275_v36 }
 0x42d   : > { %v3212_v63 = vsel %vm3211_vm8, %v3699_v5, %v3208_v39  ;;  %v3250_v35 = vmul.f32 %v3701_v24, %v3155_v11  ;;  %vm3255_vm11 = vweird.f32 %v3701_v24  ;;  %v3336_v5 = vor.u32 1.1754944e-38, %v3335_v22 }
 0x42e   : > { %v3217_v8 = vsel %vm3214_vm9, %v3216_v46, %v3212_v63  ;;  %vm3256_vm14 = vmor %vm3254_vm10, %vm3255_vm11  ;;  %vm3334_vm6 = vcmp.eq.f32.partialorder %v3333_v31, 8.507059e+37 }
 0x42f   : > { %v3703_v19 = vpop.eup %3702  ;;  %v3218_v21 = vmul.f32 %v4583_v3, %v3217_v8  ;;  %v3251_v1 = vsub.f32 1.0, %v3250_v35  ;;  %v3273_v3 = vand.u32 2147483647, %v3158_v60 }
 0x430   : > { %v3265_v37 = vmul.f32 %v3703_v19, %v3158_v60  ;;  %v4666_v44 = vpop.xlane.xlu0 %3166  ;;  %vm3270_vm13 = vweird.f32 %v3703_v19 }
 0x431   : > { %v3705_v15 = vpop.eup %3704  ;;  %3706 = vrcp.f32 %v4666_v44  ;;  %3430 = vst.msk [vmem:[%s4660_s16 + $0x2] sm:$0x3] %vm3044_vm1, %v3218_v21  ;;  %v3252_v17 = vmul.f32 %v3701_v24, %v3251_v1  ;;  %vm3271_vm3 = vmor %vm3269_vm15, %vm3270_vm13  ;;  %vm3274_vm4 = vcmp.eq.f32.partialorder %v3273_v3, 8.507059e+37  ;;  %v3318_v49 = vand.u32 2147483647, %v4666_v44 }
 0x432   : > { %v3325_v16 = vmul.f32 %v3705_v15, %v3170_v18  ;;  %v3266_v30 = vsub.f32 1.0, %v3265_v37  ;;  %vm3330_vm0 = vweird.f32 %v3705_v15  ;;  %v3320_v60 = vand.u32 2147483648, %v4666_v44 }
 0x433   : > { %v4675_v43 = vpop.xlane.xlu1 %3178  ;;  %v3253_v47 = vadd.f32 %v3701_v24, %v3252_v17  ;;  %vm3331_vm5 = vmor %vm3329_vm2, %vm3330_vm0  ;;  %vm3314_vm8 = vweird.f32 %v4666_v44  ;;  %vm3319_vm11 = vcmp.eq.f32.partialorder %v3318_v49, 8.507059e+37 }
 0x434   : > { %v3326_v45 = vsub.f32 1.0, %v3325_v16  ;;  %v3267_v28 = vmul.f32 %v3703_v19, %v3266_v30  ;;  %3708 = vrcp.f32 %v4675_v43  ;;  %v3378_v46 = vand.u32 2147483647, %v4675_v43 }
 0x435   : > { %v3257_v38 = vsel %vm3256_vm14, %v3701_v24, %v3253_v47 }
 0x436   : > { %v3327_v34 = vmul.f32 %v3705_v15, %v3326_v45  ;;  %v3268_v55 = vadd.f32 %v3703_v19, %v3267_v28  ;;  %v3262_v23 = vsel %vm4671_vm12, %v3261_v26, %v3257_v38  ;;  %vm3374_vm12 = vweird.f32 %v4675_v43 }
 0x437   : > { %v3707_v25 = vpop.eup %3706  ;;  %v3263_v57 = vmul.f32 %v4589_v53, %v3262_v23  ;;  %vm3379_vm14 = vcmp.eq.f32.partialorder %v3378_v46, 8.507059e+37 }
 0x438   : > { %v3328_v58 = vadd.f32 %v3705_v15, %v3327_v34  ;;  %v3272_v54 = vsel %vm3271_vm3, %v3703_v19, %v3268_v55  ;;  %v3310_v62 = vmul.f32 %v3707_v25, %v4666_v44  ;;  %vm3315_vm7 = vweird.f32 %v3707_v25 }
 0x439   : > { %v3277_v0 = vsel %vm3274_vm4, %v3276_v6, %v3272_v54  ;;  %3433 = vst.msk [vmem:[%s4660_s16 + $0x8] sm:$0x3] %vm3044_vm1, %v3263_v57  ;;  %vm3316_vm10 = vmor %vm3314_vm8, %vm3315_vm7 }
 0x43a   : > { %v3709_v4 = vpop.eup %3708  ;;  %v3332_v56 = vsel %vm3331_vm5, %v3705_v15, %v3328_v58  ;;  %v3278_v11 = vmul.f32 %v4594_v48, %v3277_v0  ;;  %v3311_v9 = vsub.f32 1.0, %v3310_v62  ;;  %v3380_v48 = vand.u32 2147483648, %v4675_v43 }
 0x43b   : > { %v3337_v10 = vsel %vm3334_vm6, %v3336_v5, %v3332_v56  ;;  %v3370_v53 = vmul.f32 %v3709_v4, %v4675_v43  ;;  %v3149_v50 = vpop.xlane.xlu0 %3148  ;;  %vm3375_vm9 = vweird.f32 %v3709_v4 }
 0x43c   : > { %v3338_v59 = vmul.f32 %v4599_v61, %v3337_v10  ;;  %3434 = vst.msk [vmem:[%s4660_s16 + $0xa] sm:$0x3] %vm3044_vm1, %v3278_v11  ;;  %v3312_v12 = vmul.f32 %v3707_v25, %v3311_v9  ;;  %3710 = vrcp.f32 %v3149_v50  ;;  %v3321_v61 = vor.u32 1.1754944e-38, %v3320_v60  ;;  %vm3376_vm13 = vmor %vm3374_vm12, %vm3375_vm9 }
 0x43d   : > { %v3371_v18 = vsub.f32 1.0, %v3370_v53  ;;  %v3381_v20 = vor.u32 1.1754944e-38, %v3380_v48  ;;  %v3230_v16 = vand.u32 2147483648, %v3149_v50  ;;  %v3228_v13 = vand.u32 2147483647, %v3149_v50 }
 0x43e   : > { %3438 = vst.msk [vmem:[%s4660_s16 + $0x12] sm:$0x3] %vm3044_vm1, %v3338_v59  ;;  %v3313_v39 = vadd.f32 %v3707_v25, %v3312_v12  ;;  %vm3224_vm0 = vweird.f32 %v3149_v50 }
 0x43f   : > { %v3372_v24 = vmul.f32 %v3709_v4, %v3371_v18  ;;  %v3231_v36 = vor.u32 1.1754944e-38, %v3230_v16  ;;  %vm3229_vm3 = vcmp.eq.f32.partialorder %v3228_v13, 8.507059e+37 }
 0x440   : > { %v3317_v63 = vsel %vm3316_vm10, %v3707_v25, %v3313_v39 }
 0x441   : > { %v3373_v35 = vadd.f32 %v3709_v4, %v3372_v24  ;;  %v3322_v19 = vsel %vm3319_vm11, %v3321_v61, %v3317_v63 }
 0x442   : > { %v3711_v8 = vpop.eup %3710  ;;  %v3323_v21 = vmul.f32 %v4603_v40, %v3322_v19 }
 0x443   : > { %v3377_v1 = vsel %vm3376_vm13, %v3709_v4, %v3373_v35  ;;  %v3220_v37 = vmul.f32 %v3711_v8, %v3149_v50  ;;  %v3152_v44 = vpop.xlane.xlu1 %3151  ;;  %vm3225_vm15 = vweird.f32 %v3711_v8 }
 0x444   : > { %v3382_v15 = vsel %vm3379_vm14, %v3381_v20, %v3377_v1  ;;  %3437 = vst.msk [vmem:[%s4660_s16 + $0x10] sm:$0x3] %vm3044_vm1, %v3323_v21  ;;  %3712 = vrcp.f32 %v3152_v44  ;;  %vm3226_vm2 = vmor %vm3224_vm0, %vm3225_vm15  ;;  %v3245_v22 = vand.u32 2147483648, %v3152_v44  ;;  %v3243_v34 = vand.u32 2147483647, %v3152_v44 }
 0x445   : > { %v3383_v42 = vmul.f32 %v4608_v7, %v3382_v15  ;;  %v3221_v17 = vsub.f32 1.0, %v3220_v37  ;;  %vm3239_vm5 = vweird.f32 %v3152_v44 }
 0x446   : > { %v3246_v6 = vor.u32 1.1754944e-38, %v3245_v22  ;;  %vm3244_vm7 = vcmp.eq.f32.partialorder %v3243_v34, 8.507059e+37 }
 0x447   : > { %3441 = vst.msk [vmem:[%s4660_s16 + $0x18] sm:$0x3] %vm3044_vm1, %v3383_v42  ;;  %v3222_v30 = vmul.f32 %v3711_v8, %v3221_v17 }
 0x449   : > { %v3223_v3 = vadd.f32 %v3711_v8, %v3222_v30 }
 0x44a   : > { %v3713_v40 = vpop.eup %3712 }
 0x44b   : > { %v3227_v43 = vsel %vm3226_vm2, %v3711_v8, %v3223_v3  ;;  %v3235_v47 = vmul.f32 %v3713_v40, %v3152_v44  ;;  %v3164_v45 = vpop.xlane.xlu2 %3163  ;;  %v4705_v28 = vpop.xlane.xlu1 %3160  ;;  %vm3240_vm4 = vweird.f32 %v3713_v40 }
 0x44c   : > { %v3232_v7 = vsel %vm3229_vm3, %v3231_v36, %v3227_v43  ;;  %3714 = vrcp.f32 %v3164_v45  ;;  %vm3241_vm6 = vmor %vm3239_vm5, %vm3240_vm4  ;;  %v3303_v54 = vand.u32 2147483647, %v3164_v45  ;;  %v3305_v11 = vand.u32 2147483648, %v3164_v45 }
 0x44d   : > { %v3233_v26 = vmul.f32 %v4613_v2, %v3232_v7  ;;  %v3236_v31 = vsub.f32 1.0, %v3235_v47  ;;  %3716 = vrcp.f32 %v4705_v28  ;;  %vm3299_vm8 = vweird.f32 %v3164_v45 }
 0x44e   : > { %v3290_v53 = vand.u32 2147483648, %v4705_v28  ;;  %vm4722_vm10 = vcmp.eq.f32.partialorder %v3303_v54, 8.507059e+37  ;;  %vm3284_vm11 = vweird.f32 %v4705_v28  ;;  %v3288_v59 = vand.u32 2147483647, %v4705_v28 }
 0x44f   : > { %3431 = vst.msk [vmem:[%s4660_s16 + $0x4] sm:$0x3] %vm3044_vm1, %v3233_v26  ;;  %v3237_v38 = vmul.f32 %v3713_v40, %v3236_v31  ;;  %v4711_v55 = vpop.xlane.xlu0 %3175  ;;  %v3306_v48 = vor.u32 1.1754944e-38, %v3305_v11 }
 0x450   : > { %3718 = vrcp.f32 %v4711_v55  ;;  %v3291_v61 = vor.u32 1.1754944e-38, %v3290_v53  ;;  %v3365_v63 = vand.u32 2147483648, %v4711_v55  ;;  %v3363_v20 = vand.u32 2147483647, %v4711_v55 }
 0x451   : > { %v3238_v25 = vadd.f32 %v3713_v40, %v3237_v38  ;;  %vm3289_vm0 = vcmp.eq.f32.partialorder %v3288_v59, 8.507059e+37  ;;  %vm3359_vm2 = vweird.f32 %v4711_v55 }
 0x452   : > { %v3715_v23 = vpop.eup %3714  ;;  %v3366_v30 = vor.u32 1.1754944e-38, %v3365_v63  ;;  %vm3364_vm4 = vcmp.eq.f32.partialorder %v3363_v20, 8.507059e+37 }
 0x453   : > { %v3717_v57 = vpop.eup %3716  ;;  %v3242_v2 = vsel %vm3241_vm6, %v3713_v40, %v3238_v25  ;;  %v3295_v58 = vmul.f32 %v3715_v23, %v3164_v45  ;;  %v4714_v62 = vpop.xlane.xlu2 %3172  ;;  %vm3300_vm9 = vweird.f32 %v3715_v23 }
 0x454   : > { %v3247_v5 = vsel %vm3244_vm7, %v3246_v6, %v3242_v2  ;;  %v3280_v0 = vmul.f32 %v3717_v57, %v4705_v28  ;;  %3720 = vrcp.f32 %v4714_v62  ;;  %vm3285_vm12 = vweird.f32 %v3717_v57  ;;  %vm3301_vm13 = vmor %vm3299_vm8, %vm3300_vm9 }
 0x455   : > { %v3248_v4 = vmul.f32 %v4619_v27, %v3247_v5  ;;  %v3296_v56 = vsub.f32 1.0, %v3295_v58  ;;  %vm3286_vm14 = vmor %vm3284_vm11, %vm3285_vm12  ;;  %v3348_v3 = vand.u32 2147483647, %v4714_v62  ;;  %vm3344_vm6 = vweird.f32 %v4714_v62 }
 0x456   : > { %v3719_v9 = vpop.eup %3718  ;;  %v3281_v10 = vsub.f32 1.0, %v3280_v0 }
 0x457   : > { %3432 = vst.msk [vmem:[%s4660_s16 + $0x6] sm:$0x3] %vm3044_vm1, %v3248_v4  ;;  %v3297_v49 = vmul.f32 %v3715_v23, %v3296_v56  ;;  %v3355_v50 = vmul.f32 %v3719_v9, %v4711_v55  ;;  %vm3360_vm15 = vweird.f32 %v3719_v9  ;;  %vm3349_vm7 = vcmp.eq.f32.partialorder %v3348_v3, 8.507059e+37 }
 0x458   : > { %v3282_v27 = vmul.f32 %v3717_v57, %v3281_v10  ;;  %v4729_v12 = vpop.xlane.xlu0 %3184  ;;  %vm3361_vm3 = vmor %vm3359_vm2, %vm3360_vm15 }
 0x459   : > { %v3298_v18 = vadd.f32 %v3715_v23, %v3297_v49  ;;  %v3356_v39 = vsub.f32 1.0, %v3355_v50  ;;  %v4731_v24 = vpop.xlane.xlu1 %3187  ;;  %3722 = vrcp.f32 %v4729_v12  ;;  %v3410_v25 = vand.u32 2147483648, %v4729_v12 }
 0x45a   : > { %v3283_v46 = vadd.f32 %v3717_v57, %v3282_v27  ;;  %3724 = vrcp.f32 %v4731_v24  ;;  %v3721_v35 = vpop.eup %3720  ;;  %v3423_v31 = vand.u32 2147483647, %v4731_v24  ;;  %v3425_v55 = vand.u32 2147483648, %v4731_v24 }
 0x45b   : > { %v3302_v19 = vsel %vm3301_vm13, %v3715_v23, %v3298_v18  ;;  %v3357_v8 = vmul.f32 %v3719_v9, %v3356_v39  ;;  %v3340_v37 = vmul.f32 %v3721_v35, %v4714_v62  ;;  %v4744_v44 = vpop.xlane.xlu2 %3181  ;;  %vm3345_vm5 = vweird.f32 %v3721_v35 }
 0x45c   : > { %v3307_v21 = vsel %vm4722_vm10, %v3306_v48, %v3302_v19  ;;  %v3287_v1 = vsel %vm3286_vm14, %v3717_v57, %v3283_v46  ;;  %3726 = vrcp.f32 %v4744_v44  ;;  %vm3346_vm8 = vmor %vm3344_vm6, %vm3345_vm5  ;;  %v3408_v6 = vand.u32 2147483647, %v4729_v12 }
 0x45d   : > { %v3308_v15 = vmul.f32 %v4627_v29, %v3307_v21  ;;  %v3292_v42 = vsel %vm3289_vm0, %v3291_v61, %v3287_v1  ;;  %v3358_v17 = vadd.f32 %v3719_v9, %v3357_v8  ;;  %v3341_v13 = vsub.f32 1.0, %v3340_v37 }
 0x45e   : > { %v3293_v16 = vmul.f32 %v4624_v14, %v3292_v42  ;;  %v3350_v29 = vand.u32 2147483648, %v4714_v62  ;;  %vm3404_vm11 = vweird.f32 %v4729_v12  ;;  %vm3419_vm12 = vweird.f32 %v4731_v24 }
 0x45f   : > { %v3723_v40 = vpop.eup %3722  ;;  %3436 = vst.msk [vmem:[%s4660_s16 + $0xe] sm:$0x3] %vm3044_vm1, %v3308_v15  ;;  %v3362_v36 = vsel %vm3361_vm3, %v3719_v9, %v3358_v17  ;;  %v3342_v14 = vmul.f32 %v3721_v35, %v3341_v13  ;;  %vm3424_vm13 = vcmp.eq.f32.partialorder %v3423_v31, 8.507059e+37  ;;  %v3411_v4 = vor.u32 1.1754944e-38, %v3410_v25 }
 0x460   : > { %v3725_v43 = vpop.eup %3724  ;;  %3435 = vst.msk [vmem:[%s4660_s16 + $0xc] sm:$0x3] %vm3044_vm1, %v3293_v16  ;;  %v3367_v47 = vsel %vm3364_vm4, %v3366_v30, %v3362_v36  ;;  %v3400_v45 = vmul.f32 %v3723_v40, %v4729_v12  ;;  %v3351_v38 = vor.u32 1.1754944e-38, %v3350_v29  ;;  %vm3405_vm9 = vweird.f32 %v3723_v40 }
 0x461   : > { %v3368_v28 = vmul.f32 %v4635_v32, %v3367_v47  ;;  %v3415_v7 = vmul.f32 %v3725_v43, %v4731_v24  ;;  %v3343_v26 = vadd.f32 %v3721_v35, %v3342_v14  ;;  %vm3420_vm10 = vweird.f32 %v3725_v43  ;;  %vm3406_vm14 = vmor %vm3404_vm11, %vm3405_vm9 }
 0x462   : > { %v3401_v22 = vsub.f32 1.0, %v3400_v45  ;;  %v3727_v57 = vpop.eup %3726  ;;  %vm3421_vm15 = vmor %vm3419_vm12, %vm3420_vm10  ;;  %v3426_v56 = vor.u32 1.1754944e-38, %v3425_v55  ;;  %vm3409_vm0 = vcmp.eq.f32.partialorder %v3408_v6, 8.507059e+37  ;;  %v3393_v53 = vand.u32 2147483647, %v4744_v44 }
 0x463   : > { %3440 = vst.msk [vmem:[%s4660_s16 + $0x16] sm:$0x3] %vm3044_vm1, %v3368_v28  ;;  %v3416_v34 = vsub.f32 1.0, %v3415_v7  ;;  %v3347_v23 = vsel %vm3346_vm8, %v3721_v35, %v3343_v26  ;;  %v3385_v5 = vmul.f32 %v3727_v57, %v4744_v44  ;;  %v3395_v49 = vand.u32 2147483648, %v4744_v44 }
 0x464   : > { %v3402_v32 = vmul.f32 %v3723_v40, %v3401_v22  ;;  %v3352_v2 = vsel %vm3349_vm7, %v3351_v38, %v3347_v23  ;;  %vm3390_vm2 = vweird.f32 %v3727_v57  ;;  %vm3389_vm3 = vweird.f32 %v4744_v44 }
 0x465   : > { %v3417_v58 = vmul.f32 %v3725_v43, %v3416_v34  ;;  %v3353_v54 = vmul.f32 %v4640_v51, %v3352_v2  ;;  %v3386_v51 = vsub.f32 1.0, %v3385_v5  ;;  %vm3391_vm4 = vmor %vm3389_vm3, %vm3390_vm2  ;;  %v3396_v18 = vor.u32 1.1754944e-38, %v3395_v49 }
 0x466   : > { %v3403_v62 = vadd.f32 %v3723_v40, %v3402_v32  ;;  %vm3394_vm5 = vcmp.eq.f32.partialorder %v3393_v53, 8.507059e+37 }
 0x467   : > { %v3418_v0 = vadd.f32 %v3725_v43, %v3417_v58  ;;  %3439 = vst.msk [vmem:[%s4660_s16 + $0x14] sm:$0x3] %vm3044_vm1, %v3353_v54  ;;  %v3387_v27 = vmul.f32 %v3727_v57, %v3386_v51 }
 0x468   : > { %v3407_v11 = vsel %vm3406_vm14, %v3723_v40, %v3403_v62 }
 0x469   : > { %v3422_v9 = vsel %vm3421_vm15, %v3725_v43, %v3418_v0  ;;  %v3412_v10 = vsel %vm3409_vm0, %v3411_v4, %v3407_v11  ;;  %v3388_v12 = vadd.f32 %v3727_v57, %v3387_v27 }
 0x46a   : > { %v3427_v60 = vsel %vm3424_vm13, %v3426_v56, %v3422_v9  ;;  %v3413_v50 = vmul.f32 %v4644_v41, %v3412_v10 }
 0x46b   : > { %v3428_v59 = vmul.f32 %v4646_v52, %v3427_v60  ;;  %v3392_v48 = vsel %vm3391_vm4, %v3727_v57, %v3388_v12 }
 0x46c   : > { %3443 = vst.msk [vmem:[%s4660_s16 + $0x1c] sm:$0x3] %vm3044_vm1, %v3413_v50  ;;  %v3397_v39 = vsel %vm3394_vm5, %v3396_v18, %v3392_v48 }
 0x46d   : > { %3444 = vst.msk [vmem:[%s4660_s16 + $0x1e] sm:$0x3] %vm3044_vm1, %v3428_v59  ;;  %v3398_v24 = vmul.f32 %v4652_v33, %v3397_v39 }
 0x46f   : > { %3442 = vst.msk [vmem:[%s4660_s16 + $0x1a] sm:$0x3] %vm3044_vm1, %v3398_v24 }
 0x470 PF: > { %s15_s18 = sadd.s32 1, %s3750_s18  }
 0x471   : > { %p12_p4 = scmp.ge.s32.totalorder %s15_s18, 12  }
 0x473   :  { %14 = sbr.rel (!%p12_p4) target bundleno = 1 (0x1), region = 79 }

</bundles_post_ra>
